<compile_context>
chip_gen: v6e
topology: v6e:2x2x1
jax: 0.10.0
libtpu: 0.0.40
codegen_flags: <defaults>
</compile_context>

<pallas_src>
import math

import jax
import jax.numpy as jnp
from jax import lax
from jax.experimental import pallas as pl
from jax.experimental.pallas import tpu as pltpu

# ----------------------------- small config -----------------------------
B = 2            # batch
T = 8            # sequence length == max_len (power of two; see LOG2_T shift below)
MAX_LEN = T
BT = B * T       # whole batch folded into one slab of rows
C = 32           # n_dim
NH = 4           # n_head
HS = C // NH     # head size
V = 64           # vocab_size
N_LAYER = 2      # `for _ in config.n_layer` -> n_layer is an iterable; we use 2 blocks
EPS = 1e-5       # nn.LayerNorm default eps
LOG2_T = int(math.log2(T))
assert (1 << LOG2_T) == T, "T must be a power of two (in-kernel batch-id shift)"
NEG_INF = float("-inf")


# ----------------------------- in-kernel helpers -----------------------------
def _layernorm(x, gamma, beta):
    mean = jnp.mean(x, axis=-1, keepdims=True)
    var = jnp.mean((x - mean) ** 2, axis=-1, keepdims=True)
    return (x - mean) * lax.rsqrt(var + EPS) * gamma + beta


def _gelu(x):
    # TODO(synk): PyTorch nn.GELU default is the exact erf form; we use the tanh
    # approximation (no guaranteed erf lowering in Mosaic at these tiny shapes).
    c = math.sqrt(2.0 / math.pi)
    return 0.5 * x * (1.0 + jnp.tanh(c * (x + 0.044715 * x * x * x)))


# -------------------- fully fused GPT forward kernel (single program) --------------------
def gpt_kernel(x_ref,
               ln1g_ref, ln1b_ref, wqkv_ref, bqkv_ref, wpr_ref, bpr_ref,
               ln2g_ref, ln2b_ref, wfc_ref, bfc_ref, wp2_ref, bp2_ref,
               lnfg_ref, lnfb_ref, whead_ref, bhead_ref, tgt_ref,
               logits_ref, loss_ref):
    x = x_ref[...]                                               # (BT, C) f32

    # Combined (causal AND same-batch) mask: built once, reused for every layer/head.
    row = lax.broadcasted_iota(jnp.int32, (BT, BT), 0)
    col = lax.broadcasted_iota(jnp.int32, (BT, BT), 1)
    same_batch = (row >> LOG2_T) == (col >> LOG2_T)              # batch id = token_idx // T
    mask = jnp.logical_and(same_batch, col <= row)
    scale = 1.0 / math.sqrt(HS)

    for l in range(N_LAYER):                                     # static unroll (2 layers)
        # ---- ln1 + causal self-attention (all B*T rows in one slab) ----
        h = _layernorm(x, ln1g_ref[l], ln1b_ref[l])
        qkv = jnp.dot(h, wqkv_ref[l], preferred_element_type=jnp.float32) + bqkv_ref[l]
        q = qkv[:, 0 * C:1 * C]
        k = qkv[:, 1 * C:2 * C]
        v = qkv[:, 2 * C:3 * C]

        heads = []
        # TODO(synk): heads stay as a 4-iteration static loop (batch is already folded
        # into the matmul via the block-diagonal mask); a single 4-D batched dot_general
        # over a heads axis would need sublane<->lane transposes/reshapes that Mosaic
        # may not lower at these sub-(8,128) shapes.
        for hd in range(NH):
            sl = slice(hd * HS, (hd + 1) * HS)
            qh, kh, vh = q[:, sl], k[:, sl], v[:, sl]
            att = jnp.dot(qh, kh.T, preferred_element_type=jnp.float32) * scale  # (BT, BT)
            att = jnp.where(mask, att, NEG_INF)
            att = att - jnp.max(att, axis=-1, keepdims=True)
            e = jnp.exp(att)
            inv = pl.reciprocal(jnp.sum(e, axis=-1, keepdims=True), approx=True)
            p = e * inv                                          # softmax over keys
            heads.append(jnp.dot(p, vh, preferred_element_type=jnp.float32))
        y = jnp.concatenate(heads, axis=-1)                      # (BT, C)
        y = jnp.dot(y, wpr_ref[l], preferred_element_type=jnp.float32) + bpr_ref[l]
        x = x + y                                                # residual (dropout = identity)

        # ---- ln2 + MLP ----
        h2 = _layernorm(x, ln2g_ref[l], ln2b_ref[l])
        f = jnp.dot(h2, wfc_ref[l], preferred_element_type=jnp.float32) + bfc_ref[l]
        f = _gelu(f)
        f = jnp.dot(f, wp2_ref[l], preferred_element_type=jnp.float32) + bp2_ref[l]
        x = x + f

    # ---- final LN + lm_head ----
    hf = _layernorm(x, lnfg_ref[...], lnfb_ref[...])
    logits = jnp.dot(hf, whead_ref[...], preferred_element_type=jnp.float32) + bhead_ref[...]
    logits_ref[...] = logits                                     # (BT, V)

    # ---- cross-entropy: summed NLL (single vectorized reduction, mean in caller) ----
    m = jnp.max(logits, axis=-1, keepdims=True)
    lse = jnp.log(jnp.sum(jnp.exp(logits - m), axis=-1, keepdims=True)) + m   # (BT, 1)
    tgt = tgt_ref[...]                                           # (BT, 1) int32 (one tiny DMA;
    # kept in VMEM so the one-hot compare stays vectorized — SMEM refs are scalar-access only)
    vocab_ids = lax.broadcasted_iota(jnp.int32, (BT, V), 1)
    tgt_logit = jnp.sum(jnp.where(vocab_ids == tgt, logits, 0.0), axis=-1, keepdims=True)
    loss_ref[0, 0] = jnp.sum(lse - tgt_logit)                    # single write, no RMW


# ----------------------------- wrapper -----------------------------
def _vmem_full(shape):
    nd = len(shape)
    return pl.BlockSpec(shape, lambda i, _nd=nd: (0,) * _nd)


PARAM_ORDER = ["ln1_g", "ln1_b", "w_qkv", "b_qkv", "w_proj", "b_proj",
               "ln2_g", "ln2_b", "w_fc", "b_fc", "w_proj2", "b_proj2",
               "ln_f_g", "ln_f_b", "w_head", "b_head"]


def gpt_forward(params, idx, targets):
    # Embedding lookups (gathers) kept as plain-JAX glue.
    wte = jnp.take(params["wte"], idx, axis=0)          # (B, T, C)
    wpe = params["wpe"][None]                           # (1, MAX_LEN, C); T == MAX_LEN
    x = (wte + wpe).astype(jnp.float32).reshape(BT, C)  # embd dropout = identity
    tgt = targets.astype(jnp.int32).reshape(BT, 1)

    plist = [params[k] for k in PARAM_ORDER]
    in_specs = ([_vmem_full((BT, C))] +
                [_vmem_full(tuple(p.shape)) for p in plist] +
                [_vmem_full((BT, 1))])

    logits_flat, loss_sum = pl.pallas_call(
        gpt_kernel,
        out_shape=(jax.ShapeDtypeStruct((BT, V), jnp.float32),
                   jax.ShapeDtypeStruct((1, 1), jnp.float32)),
        grid=(1,),
        in_specs=in_specs,
        out_specs=(pl.BlockSpec((BT, V), lambda i: (0, 0)),
                   pl.BlockSpec((1, 1), lambda i: (0, 0), memory_space=pltpu.SMEM)),
    )(x, *plist, tgt)

    logits = logits_flat.reshape(B, T, V)
    loss = loss_sum[0, 0] / float(B * T)                # F.cross_entropy mean reduction
    return logits, loss


# ----------------------------- params -----------------------------
def init_params(key):
    keys = jax.random.split(key, 8)
    it = iter(keys)

    def nrm(shape, scale=0.02):
        return (scale * jax.random.normal(next(it), shape)).astype(jnp.float32)

    # NOTE: matmul weights kept f32 (bf16 casting would be the scale-up path; at C=32 the
    # MXU is <1% utilized either way and f32 stays closest to the reference numerics).
    return dict(
        wte=nrm((V, C)),
        wpe=nrm((MAX_LEN, C)),
        # per-layer params stacked along a leading layer axis (indexed statically in-kernel)
        ln1_g=jnp.ones((N_LAYER, 1, C), jnp.float32),
        ln1_b=jnp.zeros((N_LAYER, 1, C), jnp.float32),
        w_qkv=nrm((N_LAYER, C, 3 * C)),
        b_qkv=jnp.zeros((N_LAYER, 1, 3 * C), jnp.float32),
        w_proj=nrm((N_LAYER, C, C)),
        b_proj=jnp.zeros((N_LAYER, 1, C), jnp.float32),
        ln2_g=jnp.ones((N_LAYER, 1, C), jnp.float32),
        ln2_b=jnp.zeros((N_LAYER, 1, C), jnp.float32),
        w_fc=nrm((N_LAYER, C, 4 * C)),
        b_fc=jnp.zeros((N_LAYER, 1, 4 * C), jnp.float32),
        w_proj2=nrm((N_LAYER, 4 * C, C)),
        b_proj2=jnp.zeros((N_LAYER, 1, C), jnp.float32),
        ln_f_g=jnp.ones((1, C), jnp.float32),
        ln_f_b=jnp.zeros((1, C), jnp.float32),
        w_head=nrm((C, V)),
        b_head=jnp.zeros((1, V), jnp.float32),
    )


if __name__ == "__main__":
    key = jax.random.PRNGKey(0)
    kp, ki, kt = jax.random.split(key, 3)
    params = init_params(kp)
    idx = jax.random.randint(ki, (B, T), 0, V, dtype=jnp.int32)
    targets = jax.random.randint(kt, (B, T), 0, V, dtype=jnp.int32)

    logits, loss = jax.jit(gpt_forward)(params, idx, targets)
    jax.block_until_ready((logits, loss))
    assert logits.shape == (B, T, V)
    assert loss.shape == ()
    print("KERNEL_OK")
</pallas_src>

<mosaic_0001>
module attributes {stable_mosaic.version = 11 : i64} {
  func.func @gpt_kernel(%arg0: i32, %arg1: memref<16x32xf32, #tpu.memory_space<vmem>>, %arg2: memref<2x1x32xf32, #tpu.memory_space<vmem>>, %arg3: memref<2x1x32xf32, #tpu.memory_space<vmem>>, %arg4: memref<2x32x96xf32, #tpu.memory_space<vmem>>, %arg5: memref<2x1x96xf32, #tpu.memory_space<vmem>>, %arg6: memref<2x32x32xf32, #tpu.memory_space<vmem>>, %arg7: memref<2x1x32xf32, #tpu.memory_space<vmem>>, %arg8: memref<2x1x32xf32, #tpu.memory_space<vmem>>, %arg9: memref<2x1x32xf32, #tpu.memory_space<vmem>>, %arg10: memref<2x32x128xf32, #tpu.memory_space<vmem>>, %arg11: memref<2x1x128xf32, #tpu.memory_space<vmem>>, %arg12: memref<2x128x32xf32, #tpu.memory_space<vmem>>, %arg13: memref<2x1x32xf32, #tpu.memory_space<vmem>>, %arg14: memref<1x32xf32, #tpu.memory_space<vmem>>, %arg15: memref<1x32xf32, #tpu.memory_space<vmem>>, %arg16: memref<32x64xf32, #tpu.memory_space<vmem>>, %arg17: memref<1x64xf32, #tpu.memory_space<vmem>>, %arg18: memref<16x1xi32, #tpu.memory_space<vmem>>, %arg19: memref<16x64xf32, #tpu.memory_space<vmem>>, %arg20: memref<1x1xf32, #tpu.memory_space<smem>>) attributes {dimension_semantics = [#tpu.dimension_semantics<arbitrary>], iteration_bounds = array<i64: 1>, scalar_prefetch = 0 : i64, scratch_operands = 0 : i64, tpu.core_type = #tpu.core_type<tc>, window_params = [{pipeline_mode = #tpu.pipeline_mode<synchronous>, transform_indices = @transform_0, window_bounds = array<i64: 16, 32>}, {pipeline_mode = #tpu.pipeline_mode<synchronous>, transform_indices = @transform_1, window_bounds = array<i64: 2, 1, 32>}, {pipeline_mode = #tpu.pipeline_mode<synchronous>, transform_indices = @transform_2, window_bounds = array<i64: 2, 1, 32>}, {pipeline_mode = #tpu.pipeline_mode<synchronous>, transform_indices = @transform_3, window_bounds = array<i64: 2, 32, 96>}, {pipeline_mode = #tpu.pipeline_mode<synchronous>, transform_indices = @transform_4, window_bounds = array<i64: 2, 1, 96>}, {pipeline_mode = #tpu.pipeline_mode<synchronous>, transform_indices = @transform_5, window_bounds = array<i64: 2, 32, 32>}, {pipeline_mode = #tpu.pipeline_mode<synchronous>, transform_indices = @transform_6, window_bounds = array<i64: 2, 1, 32>}, {pipeline_mode = #tpu.pipeline_mode<synchronous>, transform_indices = @transform_7, window_bounds = array<i64: 2, 1, 32>}, {pipeline_mode = #tpu.pipeline_mode<synchronous>, transform_indices = @transform_8, window_bounds = array<i64: 2, 1, 32>}, {pipeline_mode = #tpu.pipeline_mode<synchronous>, transform_indices = @transform_9, window_bounds = array<i64: 2, 32, 128>}, {pipeline_mode = #tpu.pipeline_mode<synchronous>, transform_indices = @transform_10, window_bounds = array<i64: 2, 1, 128>}, {pipeline_mode = #tpu.pipeline_mode<synchronous>, transform_indices = @transform_11, window_bounds = array<i64: 2, 128, 32>}, {pipeline_mode = #tpu.pipeline_mode<synchronous>, transform_indices = @transform_12, window_bounds = array<i64: 2, 1, 32>}, {pipeline_mode = #tpu.pipeline_mode<synchronous>, transform_indices = @transform_13, window_bounds = array<i64: 1, 32>}, {pipeline_mode = #tpu.pipeline_mode<synchronous>, transform_indices = @transform_14, window_bounds = array<i64: 1, 32>}, {pipeline_mode = #tpu.pipeline_mode<synchronous>, transform_indices = @transform_15, window_bounds = array<i64: 32, 64>}, {pipeline_mode = #tpu.pipeline_mode<synchronous>, transform_indices = @transform_16, window_bounds = array<i64: 1, 64>}, {pipeline_mode = #tpu.pipeline_mode<synchronous>, transform_indices = @transform_17, window_bounds = array<i64: 16, 1>}, {pipeline_mode = #tpu.pipeline_mode<synchronous>, transform_indices = @transform_18, window_bounds = array<i64: 16, 64>}, {transform_indices = @transform_19, window_bounds = array<i64: 1, 1>}]} {
    %c0 = arith.constant 0 : index
    %c0_0 = arith.constant 0 : index
    %0 = vector.load %arg1[%c0, %c0_0] : memref<16x32xf32, #tpu.memory_space<vmem>>, vector<16x32xf32>
    %1 = tpu.iota {dimensions = array<i32: 0>} : vector<16x16xi32>
    %2 = tpu.iota {dimensions = array<i32: 1>} : vector<16x16xi32>
    %c3_i32 = arith.constant 3 : i32
    %3 = vector.broadcast %c3_i32 : i32 to vector<16x16xi32>
    %4 = arith.shrsi %1, %3 : vector<16x16xi32>
    %c3_i32_1 = arith.constant 3 : i32
    %5 = vector.broadcast %c3_i32_1 : i32 to vector<16x16xi32>
    %6 = arith.shrsi %2, %5 : vector<16x16xi32>
    %7 = arith.cmpi eq, %4, %6 : vector<16x16xi32>
    %8 = arith.cmpi sle, %2, %1 : vector<16x16xi32>
    %9 = arith.andi %7, %8 : vector<16x16xi1>
    %c0_2 = arith.constant 0 : index
    %c0_3 = arith.constant 0 : index
    %c0_4 = arith.constant 0 : index
    %10 = vector.load %arg2[%c0_2, %c0_3, %c0_4] : memref<2x1x32xf32, #tpu.memory_space<vmem>>, vector<1x1x32xf32>
    %11 = vector.shape_cast %10 : vector<1x1x32xf32> to vector<1x32xf32>
    %c0_5 = arith.constant 0 : index
    %c0_6 = arith.constant 0 : index
    %c0_7 = arith.constant 0 : index
    %12 = vector.load %arg3[%c0_5, %c0_6, %c0_7] : memref<2x1x32xf32, #tpu.memory_space<vmem>>, vector<1x1x32xf32>
    %13 = vector.shape_cast %12 : vector<1x1x32xf32> to vector<1x32xf32>
    %cst = arith.constant dense<0.000000e+00> : vector<16xf32>
    %14 = vector.multi_reduction <add>, %0, %cst [1] : vector<16x32xf32> to vector<16xf32>
    %15 = vector.shape_cast %14 : vector<16xf32> to vector<16x1xf32>
    %cst_8 = arith.constant 3.200000e+01 : f32
    %16 = vector.broadcast %cst_8 : f32 to vector<16x1xf32>
    %17 = arith.divf %15, %16 : vector<16x1xf32>
    %18 = vector.broadcast %17 : vector<16x1xf32> to vector<16x32xf32>
    %19 = arith.subf %0, %18 : vector<16x32xf32>
    %20 = arith.mulf %19, %19 : vector<16x32xf32>
    %cst_9 = arith.constant dense<0.000000e+00> : vector<16xf32>
    %21 = vector.multi_reduction <add>, %20, %cst_9 [1] : vector<16x32xf32> to vector<16xf32>
    %22 = vector.shape_cast %21 : vector<16xf32> to vector<16x1xf32>
    %cst_10 = arith.constant 3.200000e+01 : f32
    %23 = vector.broadcast %cst_10 : f32 to vector<16x1xf32>
    %24 = arith.divf %22, %23 : vector<16x1xf32>
    %25 = vector.broadcast %17 : vector<16x1xf32> to vector<16x32xf32>
    %26 = arith.subf %0, %25 : vector<16x32xf32>
    %cst_11 = arith.constant 9.99999974E-6 : f32
    %27 = vector.broadcast %cst_11 : f32 to vector<16x1xf32>
    %28 = arith.addf %24, %27 : vector<16x1xf32>
    %29 = math.rsqrt %28 : vector<16x1xf32>
    %30 = vector.broadcast %29 : vector<16x1xf32> to vector<16x32xf32>
    %31 = arith.mulf %26, %30 : vector<16x32xf32>
    %32 = vector.broadcast %11 : vector<1x32xf32> to vector<16x32xf32>
    %33 = arith.mulf %31, %32 : vector<16x32xf32>
    %34 = vector.broadcast %13 : vector<1x32xf32> to vector<16x32xf32>
    %35 = arith.addf %33, %34 : vector<16x32xf32>
    %c0_12 = arith.constant 0 : index
    %c0_13 = arith.constant 0 : index
    %c0_14 = arith.constant 0 : index
    %36 = vector.load %arg4[%c0_12, %c0_13, %c0_14] : memref<2x32x96xf32, #tpu.memory_space<vmem>>, vector<1x32x96xf32>
    %37 = vector.shape_cast %36 : vector<1x32x96xf32> to vector<32x96xf32>
    %cst_15 = arith.constant dense<0.000000e+00> : vector<16x96xf32>
    %38 = tpu.matmul %35, %37, %cst_15 {dimension_numbers = #tpu.dot_dimension_numbers<[1], [0], [0], [1], [0, 0, 1, 1], [], []>} : vector<16x32xf32>, vector<32x96xf32>, vector<16x96xf32> -> vector<16x96xf32>
    %c0_16 = arith.constant 0 : index
    %c0_17 = arith.constant 0 : index
    %c0_18 = arith.constant 0 : index
    %39 = vector.load %arg5[%c0_16, %c0_17, %c0_18] : memref<2x1x96xf32, #tpu.memory_space<vmem>>, vector<1x1x96xf32>
    %40 = vector.shape_cast %39 : vector<1x1x96xf32> to vector<1x96xf32>
    %41 = vector.broadcast %40 : vector<1x96xf32> to vector<16x96xf32>
    %42 = arith.addf %38, %41 : vector<16x96xf32>
    %43 = vector.extract_strided_slice %42 {offsets = [0, 0], sizes = [16, 32], strides = [1, 1]} : vector<16x96xf32> to vector<16x32xf32>
    %44 = vector.extract_strided_slice %42 {offsets = [0, 32], sizes = [16, 32], strides = [1, 1]} : vector<16x96xf32> to vector<16x32xf32>
    %45 = vector.extract_strided_slice %42 {offsets = [0, 64], sizes = [16, 32], strides = [1, 1]} : vector<16x96xf32> to vector<16x32xf32>
    %46 = vector.extract_strided_slice %43 {offsets = [0, 0], sizes = [16, 8], strides = [1, 1]} : vector<16x32xf32> to vector<16x8xf32>
    %47 = vector.extract_strided_slice %44 {offsets = [0, 0], sizes = [16, 8], strides = [1, 1]} : vector<16x32xf32> to vector<16x8xf32>
    %48 = vector.extract_strided_slice %45 {offsets = [0, 0], sizes = [16, 8], strides = [1, 1]} : vector<16x32xf32> to vector<16x8xf32>
    %49 = tpu.transpose %47, [1, 0] : vector<16x8xf32> -> vector<8x16xf32>
    %cst_19 = arith.constant dense<0.000000e+00> : vector<16x16xf32>
    %50 = tpu.matmul %46, %49, %cst_19 {dimension_numbers = #tpu.dot_dimension_numbers<[1], [0], [0], [1], [0, 0, 1, 1], [], []>} : vector<16x8xf32>, vector<8x16xf32>, vector<16x16xf32> -> vector<16x16xf32>
    %cst_20 = arith.constant 0.353553385 : f32
    %51 = vector.broadcast %cst_20 : f32 to vector<16x16xf32>
    %52 = arith.mulf %50, %51 : vector<16x16xf32>
    %cst_21 = arith.constant 0xFF800000 : f32
    %53 = vector.broadcast %cst_21 : f32 to vector<16x16xf32>
    %54 = arith.select %9, %52, %53 : vector<16x16xi1>, vector<16x16xf32>
    %cst_22 = arith.constant dense<0xFF800000> : vector<16xf32>
    %55 = vector.multi_reduction <maximumf>, %54, %cst_22 [1] : vector<16x16xf32> to vector<16xf32>
    %56 = vector.shape_cast %55 : vector<16xf32> to vector<16x1xf32>
    %57 = vector.broadcast %56 : vector<16x1xf32> to vector<16x16xf32>
    %58 = arith.subf %54, %57 : vector<16x16xf32>
    %59 = math.exp %58 : vector<16x16xf32>
    %cst_23 = arith.constant dense<0.000000e+00> : vector<16xf32>
    %60 = vector.multi_reduction <add>, %59, %cst_23 [1] : vector<16x16xf32> to vector<16xf32>
    %61 = vector.shape_cast %60 : vector<16xf32> to vector<16x1xf32>
    %62 = tpu.reciprocal %61 {approx = true} : vector<16x1xf32> -> vector<16x1xf32>
    %63 = vector.broadcast %62 : vector<16x1xf32> to vector<16x16xf32>
    %64 = arith.mulf %59, %63 : vector<16x16xf32>
    %cst_24 = arith.constant dense<0.000000e+00> : vector<16x8xf32>
    %65 = tpu.matmul %64, %48, %cst_24 {dimension_numbers = #tpu.dot_dimension_numbers<[1], [0], [0], [1], [0, 0, 1, 1], [], []>} : vector<16x16xf32>, vector<16x8xf32>, vector<16x8xf32> -> vector<16x8xf32>
    %66 = vector.extract_strided_slice %43 {offsets = [0, 8], sizes = [16, 8], strides = [1, 1]} : vector<16x32xf32> to vector<16x8xf32>
    %67 = vector.extract_strided_slice %44 {offsets = [0, 8], sizes = [16, 8], strides = [1, 1]} : vector<16x32xf32> to vector<16x8xf32>
    %68 = vector.extract_strided_slice %45 {offsets = [0, 8], sizes = [16, 8], strides = [1, 1]} : vector<16x32xf32> to vector<16x8xf32>
    %69 = tpu.transpose %67, [1, 0] : vector<16x8xf32> -> vector<8x16xf32>
    %cst_25 = arith.constant dense<0.000000e+00> : vector<16x16xf32>
    %70 = tpu.matmul %66, %69, %cst_25 {dimension_numbers = #tpu.dot_dimension_numbers<[1], [0], [0], [1], [0, 0, 1, 1], [], []>} : vector<16x8xf32>, vector<8x16xf32>, vector<16x16xf32> -> vector<16x16xf32>
    %cst_26 = arith.constant 0.353553385 : f32
    %71 = vector.broadcast %cst_26 : f32 to vector<16x16xf32>
    %72 = arith.mulf %70, %71 : vector<16x16xf32>
    %cst_27 = arith.constant 0xFF800000 : f32
    %73 = vector.broadcast %cst_27 : f32 to vector<16x16xf32>
    %74 = arith.select %9, %72, %73 : vector<16x16xi1>, vector<16x16xf32>
    %cst_28 = arith.constant dense<0xFF800000> : vector<16xf32>
    %75 = vector.multi_reduction <maximumf>, %74, %cst_28 [1] : vector<16x16xf32> to vector<16xf32>
    %76 = vector.shape_cast %75 : vector<16xf32> to vector<16x1xf32>
    %77 = vector.broadcast %76 : vector<16x1xf32> to vector<16x16xf32>
    %78 = arith.subf %74, %77 : vector<16x16xf32>
    %79 = math.exp %78 : vector<16x16xf32>
    %cst_29 = arith.constant dense<0.000000e+00> : vector<16xf32>
    %80 = vector.multi_reduction <add>, %79, %cst_29 [1] : vector<16x16xf32> to vector<16xf32>
    %81 = vector.shape_cast %80 : vector<16xf32> to vector<16x1xf32>
    %82 = tpu.reciprocal %81 {approx = true} : vector<16x1xf32> -> vector<16x1xf32>
    %83 = vector.broadcast %82 : vector<16x1xf32> to vector<16x16xf32>
    %84 = arith.mulf %79, %83 : vector<16x16xf32>
    %cst_30 = arith.constant dense<0.000000e+00> : vector<16x8xf32>
    %85 = tpu.matmul %84, %68, %cst_30 {dimension_numbers = #tpu.dot_dimension_numbers<[1], [0], [0], [1], [0, 0, 1, 1], [], []>} : vector<16x16xf32>, vector<16x8xf32>, vector<16x8xf32> -> vector<16x8xf32>
    %86 = vector.extract_strided_slice %43 {offsets = [0, 16], sizes = [16, 8], strides = [1, 1]} : vector<16x32xf32> to vector<16x8xf32>
    %87 = vector.extract_strided_slice %44 {offsets = [0, 16], sizes = [16, 8], strides = [1, 1]} : vector<16x32xf32> to vector<16x8xf32>
    %88 = vector.extract_strided_slice %45 {offsets = [0, 16], sizes = [16, 8], strides = [1, 1]} : vector<16x32xf32> to vector<16x8xf32>
    %89 = tpu.transpose %87, [1, 0] : vector<16x8xf32> -> vector<8x16xf32>
    %cst_31 = arith.constant dense<0.000000e+00> : vector<16x16xf32>
    %90 = tpu.matmul %86, %89, %cst_31 {dimension_numbers = #tpu.dot_dimension_numbers<[1], [0], [0], [1], [0, 0, 1, 1], [], []>} : vector<16x8xf32>, vector<8x16xf32>, vector<16x16xf32> -> vector<16x16xf32>
    %cst_32 = arith.constant 0.353553385 : f32
    %91 = vector.broadcast %cst_32 : f32 to vector<16x16xf32>
    %92 = arith.mulf %90, %91 : vector<16x16xf32>
    %cst_33 = arith.constant 0xFF800000 : f32
    %93 = vector.broadcast %cst_33 : f32 to vector<16x16xf32>
    %94 = arith.select %9, %92, %93 : vector<16x16xi1>, vector<16x16xf32>
    %cst_34 = arith.constant dense<0xFF800000> : vector<16xf32>
    %95 = vector.multi_reduction <maximumf>, %94, %cst_34 [1] : vector<16x16xf32> to vector<16xf32>
    %96 = vector.shape_cast %95 : vector<16xf32> to vector<16x1xf32>
    %97 = vector.broadcast %96 : vector<16x1xf32> to vector<16x16xf32>
    %98 = arith.subf %94, %97 : vector<16x16xf32>
    %99 = math.exp %98 : vector<16x16xf32>
    %cst_35 = arith.constant dense<0.000000e+00> : vector<16xf32>
    %100 = vector.multi_reduction <add>, %99, %cst_35 [1] : vector<16x16xf32> to vector<16xf32>
    %101 = vector.shape_cast %100 : vector<16xf32> to vector<16x1xf32>
    %102 = tpu.reciprocal %101 {approx = true} : vector<16x1xf32> -> vector<16x1xf32>
    %103 = vector.broadcast %102 : vector<16x1xf32> to vector<16x16xf32>
    %104 = arith.mulf %99, %103 : vector<16x16xf32>
    %cst_36 = arith.constant dense<0.000000e+00> : vector<16x8xf32>
    %105 = tpu.matmul %104, %88, %cst_36 {dimension_numbers = #tpu.dot_dimension_numbers<[1], [0], [0], [1], [0, 0, 1, 1], [], []>} : vector<16x16xf32>, vector<16x8xf32>, vector<16x8xf32> -> vector<16x8xf32>
    %106 = vector.extract_strided_slice %43 {offsets = [0, 24], sizes = [16, 8], strides = [1, 1]} : vector<16x32xf32> to vector<16x8xf32>
    %107 = vector.extract_strided_slice %44 {offsets = [0, 24], sizes = [16, 8], strides = [1, 1]} : vector<16x32xf32> to vector<16x8xf32>
    %108 = vector.extract_strided_slice %45 {offsets = [0, 24], sizes = [16, 8], strides = [1, 1]} : vector<16x32xf32> to vector<16x8xf32>
    %109 = tpu.transpose %107, [1, 0] : vector<16x8xf32> -> vector<8x16xf32>
    %cst_37 = arith.constant dense<0.000000e+00> : vector<16x16xf32>
    %110 = tpu.matmul %106, %109, %cst_37 {dimension_numbers = #tpu.dot_dimension_numbers<[1], [0], [0], [1], [0, 0, 1, 1], [], []>} : vector<16x8xf32>, vector<8x16xf32>, vector<16x16xf32> -> vector<16x16xf32>
    %cst_38 = arith.constant 0.353553385 : f32
    %111 = vector.broadcast %cst_38 : f32 to vector<16x16xf32>
    %112 = arith.mulf %110, %111 : vector<16x16xf32>
    %cst_39 = arith.constant 0xFF800000 : f32
    %113 = vector.broadcast %cst_39 : f32 to vector<16x16xf32>
    %114 = arith.select %9, %112, %113 : vector<16x16xi1>, vector<16x16xf32>
    %cst_40 = arith.constant dense<0xFF800000> : vector<16xf32>
    %115 = vector.multi_reduction <maximumf>, %114, %cst_40 [1] : vector<16x16xf32> to vector<16xf32>
    %116 = vector.shape_cast %115 : vector<16xf32> to vector<16x1xf32>
    %117 = vector.broadcast %116 : vector<16x1xf32> to vector<16x16xf32>
    %118 = arith.subf %114, %117 : vector<16x16xf32>
    %119 = math.exp %118 : vector<16x16xf32>
    %cst_41 = arith.constant dense<0.000000e+00> : vector<16xf32>
    %120 = vector.multi_reduction <add>, %119, %cst_41 [1] : vector<16x16xf32> to vector<16xf32>
    %121 = vector.shape_cast %120 : vector<16xf32> to vector<16x1xf32>
    %122 = tpu.reciprocal %121 {approx = true} : vector<16x1xf32> -> vector<16x1xf32>
    %123 = vector.broadcast %122 : vector<16x1xf32> to vector<16x16xf32>
    %124 = arith.mulf %119, %123 : vector<16x16xf32>
    %cst_42 = arith.constant dense<0.000000e+00> : vector<16x8xf32>
    %125 = tpu.matmul %124, %108, %cst_42 {dimension_numbers = #tpu.dot_dimension_numbers<[1], [0], [0], [1], [0, 0, 1, 1], [], []>} : vector<16x16xf32>, vector<16x8xf32>, vector<16x8xf32> -> vector<16x8xf32>
    %126 = tpu.concatenate %65, %85, %105, %125 in 1 : vector<16x8xf32>, vector<16x8xf32>, vector<16x8xf32>, vector<16x8xf32> -> vector<16x32xf32>
    %c0_43 = arith.constant 0 : index
    %c0_44 = arith.constant 0 : index
    %c0_45 = arith.constant 0 : index
    %127 = vector.load %arg6[%c0_43, %c0_44, %c0_45] : memref<2x32x32xf32, #tpu.memory_space<vmem>>, vector<1x32x32xf32>
    %128 = vector.shape_cast %127 : vector<1x32x32xf32> to vector<32x32xf32>
    %cst_46 = arith.constant dense<0.000000e+00> : vector<16x32xf32>
    %129 = tpu.matmul %126, %128, %cst_46 {dimension_numbers = #tpu.dot_dimension_numbers<[1], [0], [0], [1], [0, 0, 1, 1], [], []>} : vector<16x32xf32>, vector<32x32xf32>, vector<16x32xf32> -> vector<16x32xf32>
    %c0_47 = arith.constant 0 : index
    %c0_48 = arith.constant 0 : index
    %c0_49 = arith.constant 0 : index
    %130 = vector.load %arg7[%c0_47, %c0_48, %c0_49] : memref<2x1x32xf32, #tpu.memory_space<vmem>>, vector<1x1x32xf32>
    %131 = vector.shape_cast %130 : vector<1x1x32xf32> to vector<1x32xf32>
    %132 = vector.broadcast %131 : vector<1x32xf32> to vector<16x32xf32>
    %133 = arith.addf %129, %132 : vector<16x32xf32>
    %134 = arith.addf %0, %133 : vector<16x32xf32>
    %c0_50 = arith.constant 0 : index
    %c0_51 = arith.constant 0 : index
    %c0_52 = arith.constant 0 : index
    %135 = vector.load %arg8[%c0_50, %c0_51, %c0_52] : memref<2x1x32xf32, #tpu.memory_space<vmem>>, vector<1x1x32xf32>
    %136 = vector.shape_cast %135 : vector<1x1x32xf32> to vector<1x32xf32>
    %c0_53 = arith.constant 0 : index
    %c0_54 = arith.constant 0 : index
    %c0_55 = arith.constant 0 : index
    %137 = vector.load %arg9[%c0_53, %c0_54, %c0_55] : memref<2x1x32xf32, #tpu.memory_space<vmem>>, vector<1x1x32xf32>
    %138 = vector.shape_cast %137 : vector<1x1x32xf32> to vector<1x32xf32>
    %cst_56 = arith.constant dense<0.000000e+00> : vector<16xf32>
    %139 = vector.multi_reduction <add>, %134, %cst_56 [1] : vector<16x32xf32> to vector<16xf32>
    %140 = vector.shape_cast %139 : vector<16xf32> to vector<16x1xf32>
    %cst_57 = arith.constant 3.200000e+01 : f32
    %141 = vector.broadcast %cst_57 : f32 to vector<16x1xf32>
    %142 = arith.divf %140, %141 : vector<16x1xf32>
    %143 = vector.broadcast %142 : vector<16x1xf32> to vector<16x32xf32>
    %144 = arith.subf %134, %143 : vector<16x32xf32>
    %145 = arith.mulf %144, %144 : vector<16x32xf32>
    %cst_58 = arith.constant dense<0.000000e+00> : vector<16xf32>
    %146 = vector.multi_reduction <add>, %145, %cst_58 [1] : vector<16x32xf32> to vector<16xf32>
    %147 = vector.shape_cast %146 : vector<16xf32> to vector<16x1xf32>
    %cst_59 = arith.constant 3.200000e+01 : f32
    %148 = vector.broadcast %cst_59 : f32 to vector<16x1xf32>
    %149 = arith.divf %147, %148 : vector<16x1xf32>
    %150 = vector.broadcast %142 : vector<16x1xf32> to vector<16x32xf32>
    %151 = arith.subf %134, %150 : vector<16x32xf32>
    %cst_60 = arith.constant 9.99999974E-6 : f32
    %152 = vector.broadcast %cst_60 : f32 to vector<16x1xf32>
    %153 = arith.addf %149, %152 : vector<16x1xf32>
    %154 = math.rsqrt %153 : vector<16x1xf32>
    %155 = vector.broadcast %154 : vector<16x1xf32> to vector<16x32xf32>
    %156 = arith.mulf %151, %155 : vector<16x32xf32>
    %157 = vector.broadcast %136 : vector<1x32xf32> to vector<16x32xf32>
    %158 = arith.mulf %156, %157 : vector<16x32xf32>
    %159 = vector.broadcast %138 : vector<1x32xf32> to vector<16x32xf32>
    %160 = arith.addf %158, %159 : vector<16x32xf32>
    %c0_61 = arith.constant 0 : index
    %c0_62 = arith.constant 0 : index
    %c0_63 = arith.constant 0 : index
    %161 = vector.load %arg10[%c0_61, %c0_62, %c0_63] : memref<2x32x128xf32, #tpu.memory_space<vmem>>, vector<1x32x128xf32>
    %162 = vector.shape_cast %161 : vector<1x32x128xf32> to vector<32x128xf32>
    %cst_64 = arith.constant dense<0.000000e+00> : vector<16x128xf32>
    %163 = tpu.matmul %160, %162, %cst_64 {dimension_numbers = #tpu.dot_dimension_numbers<[1], [0], [0], [1], [0, 0, 1, 1], [], []>} : vector<16x32xf32>, vector<32x128xf32>, vector<16x128xf32> -> vector<16x128xf32>
    %c0_65 = arith.constant 0 : index
    %c0_66 = arith.constant 0 : index
    %c0_67 = arith.constant 0 : index
    %164 = vector.load %arg11[%c0_65, %c0_66, %c0_67] : memref<2x1x128xf32, #tpu.memory_space<vmem>>, vector<1x1x128xf32>
    %165 = vector.shape_cast %164 : vector<1x1x128xf32> to vector<1x128xf32>
    %166 = vector.broadcast %165 : vector<1x128xf32> to vector<16x128xf32>
    %167 = arith.addf %163, %166 : vector<16x128xf32>
    %cst_68 = arith.constant 5.000000e-01 : f32
    %168 = vector.broadcast %cst_68 : f32 to vector<16x128xf32>
    %169 = arith.mulf %168, %167 : vector<16x128xf32>
    %cst_69 = arith.constant 4.471500e-02 : f32
    %170 = vector.broadcast %cst_69 : f32 to vector<16x128xf32>
    %171 = arith.mulf %170, %167 : vector<16x128xf32>
    %172 = arith.mulf %171, %167 : vector<16x128xf32>
    %173 = arith.mulf %172, %167 : vector<16x128xf32>
    %174 = arith.addf %167, %173 : vector<16x128xf32>
    %cst_70 = arith.constant 0.797884583 : f32
    %175 = vector.broadcast %cst_70 : f32 to vector<16x128xf32>
    %176 = arith.mulf %175, %174 : vector<16x128xf32>
    %177 = math.tanh %176 : vector<16x128xf32>
    %cst_71 = arith.constant 1.000000e+00 : f32
    %178 = vector.broadcast %cst_71 : f32 to vector<16x128xf32>
    %179 = arith.addf %178, %177 : vector<16x128xf32>
    %180 = arith.mulf %169, %179 : vector<16x128xf32>
    %c0_72 = arith.constant 0 : index
    %c0_73 = arith.constant 0 : index
    %c0_74 = arith.constant 0 : index
    %181 = vector.load %arg12[%c0_72, %c0_73, %c0_74] : memref<2x128x32xf32, #tpu.memory_space<vmem>>, vector<1x128x32xf32>
    %182 = vector.shape_cast %181 : vector<1x128x32xf32> to vector<128x32xf32>
    %cst_75 = arith.constant dense<0.000000e+00> : vector<16x32xf32>
    %183 = tpu.matmul %180, %182, %cst_75 {dimension_numbers = #tpu.dot_dimension_numbers<[1], [0], [0], [1], [0, 0, 1, 1], [], []>} : vector<16x128xf32>, vector<128x32xf32>, vector<16x32xf32> -> vector<16x32xf32>
    %c0_76 = arith.constant 0 : index
    %c0_77 = arith.constant 0 : index
    %c0_78 = arith.constant 0 : index
    %184 = vector.load %arg13[%c0_76, %c0_77, %c0_78] : memref<2x1x32xf32, #tpu.memory_space<vmem>>, vector<1x1x32xf32>
    %185 = vector.shape_cast %184 : vector<1x1x32xf32> to vector<1x32xf32>
    %186 = vector.broadcast %185 : vector<1x32xf32> to vector<16x32xf32>
    %187 = arith.addf %183, %186 : vector<16x32xf32>
    %188 = arith.addf %134, %187 : vector<16x32xf32>
    %c1 = arith.constant 1 : index
    %c0_79 = arith.constant 0 : index
    %c0_80 = arith.constant 0 : index
    %189 = vector.load %arg2[%c1, %c0_79, %c0_80] : memref<2x1x32xf32, #tpu.memory_space<vmem>>, vector<1x1x32xf32>
    %190 = vector.shape_cast %189 : vector<1x1x32xf32> to vector<1x32xf32>
    %c1_81 = arith.constant 1 : index
    %c0_82 = arith.constant 0 : index
    %c0_83 = arith.constant 0 : index
    %191 = vector.load %arg3[%c1_81, %c0_82, %c0_83] : memref<2x1x32xf32, #tpu.memory_space<vmem>>, vector<1x1x32xf32>
    %192 = vector.shape_cast %191 : vector<1x1x32xf32> to vector<1x32xf32>
    %cst_84 = arith.constant dense<0.000000e+00> : vector<16xf32>
    %193 = vector.multi_reduction <add>, %188, %cst_84 [1] : vector<16x32xf32> to vector<16xf32>
    %194 = vector.shape_cast %193 : vector<16xf32> to vector<16x1xf32>
    %cst_85 = arith.constant 3.200000e+01 : f32
    %195 = vector.broadcast %cst_85 : f32 to vector<16x1xf32>
    %196 = arith.divf %194, %195 : vector<16x1xf32>
    %197 = vector.broadcast %196 : vector<16x1xf32> to vector<16x32xf32>
    %198 = arith.subf %188, %197 : vector<16x32xf32>
    %199 = arith.mulf %198, %198 : vector<16x32xf32>
    %cst_86 = arith.constant dense<0.000000e+00> : vector<16xf32>
    %200 = vector.multi_reduction <add>, %199, %cst_86 [1] : vector<16x32xf32> to vector<16xf32>
    %201 = vector.shape_cast %200 : vector<16xf32> to vector<16x1xf32>
    %cst_87 = arith.constant 3.200000e+01 : f32
    %202 = vector.broadcast %cst_87 : f32 to vector<16x1xf32>
    %203 = arith.divf %201, %202 : vector<16x1xf32>
    %204 = vector.broadcast %196 : vector<16x1xf32> to vector<16x32xf32>
    %205 = arith.subf %188, %204 : vector<16x32xf32>
    %cst_88 = arith.constant 9.99999974E-6 : f32
    %206 = vector.broadcast %cst_88 : f32 to vector<16x1xf32>
    %207 = arith.addf %203, %206 : vector<16x1xf32>
    %208 = math.rsqrt %207 : vector<16x1xf32>
    %209 = vector.broadcast %208 : vector<16x1xf32> to vector<16x32xf32>
    %210 = arith.mulf %205, %209 : vector<16x32xf32>
    %211 = vector.broadcast %190 : vector<1x32xf32> to vector<16x32xf32>
    %212 = arith.mulf %210, %211 : vector<16x32xf32>
    %213 = vector.broadcast %192 : vector<1x32xf32> to vector<16x32xf32>
    %214 = arith.addf %212, %213 : vector<16x32xf32>
    %c1_89 = arith.constant 1 : index
    %c0_90 = arith.constant 0 : index
    %c0_91 = arith.constant 0 : index
    %215 = vector.load %arg4[%c1_89, %c0_90, %c0_91] : memref<2x32x96xf32, #tpu.memory_space<vmem>>, vector<1x32x96xf32>
    %216 = vector.shape_cast %215 : vector<1x32x96xf32> to vector<32x96xf32>
    %cst_92 = arith.constant dense<0.000000e+00> : vector<16x96xf32>
    %217 = tpu.matmul %214, %216, %cst_92 {dimension_numbers = #tpu.dot_dimension_numbers<[1], [0], [0], [1], [0, 0, 1, 1], [], []>} : vector<16x32xf32>, vector<32x96xf32>, vector<16x96xf32> -> vector<16x96xf32>
    %c1_93 = arith.constant 1 : index
    %c0_94 = arith.constant 0 : index
    %c0_95 = arith.constant 0 : index
    %218 = vector.load %arg5[%c1_93, %c0_94, %c0_95] : memref<2x1x96xf32, #tpu.memory_space<vmem>>, vector<1x1x96xf32>
    %219 = vector.shape_cast %218 : vector<1x1x96xf32> to vector<1x96xf32>
    %220 = vector.broadcast %219 : vector<1x96xf32> to vector<16x96xf32>
    %221 = arith.addf %217, %220 : vector<16x96xf32>
    %222 = vector.extract_strided_slice %221 {offsets = [0, 0], sizes = [16, 32], strides = [1, 1]} : vector<16x96xf32> to vector<16x32xf32>
    %223 = vector.extract_strided_slice %221 {offsets = [0, 32], sizes = [16, 32], strides = [1, 1]} : vector<16x96xf32> to vector<16x32xf32>
    %224 = vector.extract_strided_slice %221 {offsets = [0, 64], sizes = [16, 32], strides = [1, 1]} : vector<16x96xf32> to vector<16x32xf32>
    %225 = vector.extract_strided_slice %222 {offsets = [0, 0], sizes = [16, 8], strides = [1, 1]} : vector<16x32xf32> to vector<16x8xf32>
    %226 = vector.extract_strided_slice %223 {offsets = [0, 0], sizes = [16, 8], strides = [1, 1]} : vector<16x32xf32> to vector<16x8xf32>
    %227 = vector.extract_strided_slice %224 {offsets = [0, 0], sizes = [16, 8], strides = [1, 1]} : vector<16x32xf32> to vector<16x8xf32>
    %228 = tpu.transpose %226, [1, 0] : vector<16x8xf32> -> vector<8x16xf32>
    %cst_96 = arith.constant dense<0.000000e+00> : vector<16x16xf32>
    %229 = tpu.matmul %225, %228, %cst_96 {dimension_numbers = #tpu.dot_dimension_numbers<[1], [0], [0], [1], [0, 0, 1, 1], [], []>} : vector<16x8xf32>, vector<8x16xf32>, vector<16x16xf32> -> vector<16x16xf32>
    %cst_97 = arith.constant 0.353553385 : f32
    %230 = vector.broadcast %cst_97 : f32 to vector<16x16xf32>
    %231 = arith.mulf %229, %230 : vector<16x16xf32>
    %cst_98 = arith.constant 0xFF800000 : f32
    %232 = vector.broadcast %cst_98 : f32 to vector<16x16xf32>
    %233 = arith.select %9, %231, %232 : vector<16x16xi1>, vector<16x16xf32>
    %cst_99 = arith.constant dense<0xFF800000> : vector<16xf32>
    %234 = vector.multi_reduction <maximumf>, %233, %cst_99 [1] : vector<16x16xf32> to vector<16xf32>
    %235 = vector.shape_cast %234 : vector<16xf32> to vector<16x1xf32>
    %236 = vector.broadcast %235 : vector<16x1xf32> to vector<16x16xf32>
    %237 = arith.subf %233, %236 : vector<16x16xf32>
    %238 = math.exp %237 : vector<16x16xf32>
    %cst_100 = arith.constant dense<0.000000e+00> : vector<16xf32>
    %239 = vector.multi_reduction <add>, %238, %cst_100 [1] : vector<16x16xf32> to vector<16xf32>
    %240 = vector.shape_cast %239 : vector<16xf32> to vector<16x1xf32>
    %241 = tpu.reciprocal %240 {approx = true} : vector<16x1xf32> -> vector<16x1xf32>
    %242 = vector.broadcast %241 : vector<16x1xf32> to vector<16x16xf32>
    %243 = arith.mulf %238, %242 : vector<16x16xf32>
    %cst_101 = arith.constant dense<0.000000e+00> : vector<16x8xf32>
    %244 = tpu.matmul %243, %227, %cst_101 {dimension_numbers = #tpu.dot_dimension_numbers<[1], [0], [0], [1], [0, 0, 1, 1], [], []>} : vector<16x16xf32>, vector<16x8xf32>, vector<16x8xf32> -> vector<16x8xf32>
    %245 = vector.extract_strided_slice %222 {offsets = [0, 8], sizes = [16, 8], strides = [1, 1]} : vector<16x32xf32> to vector<16x8xf32>
    %246 = vector.extract_strided_slice %223 {offsets = [0, 8], sizes = [16, 8], strides = [1, 1]} : vector<16x32xf32> to vector<16x8xf32>
    %247 = vector.extract_strided_slice %224 {offsets = [0, 8], sizes = [16, 8], strides = [1, 1]} : vector<16x32xf32> to vector<16x8xf32>
    %248 = tpu.transpose %246, [1, 0] : vector<16x8xf32> -> vector<8x16xf32>
    %cst_102 = arith.constant dense<0.000000e+00> : vector<16x16xf32>
    %249 = tpu.matmul %245, %248, %cst_102 {dimension_numbers = #tpu.dot_dimension_numbers<[1], [0], [0], [1], [0, 0, 1, 1], [], []>} : vector<16x8xf32>, vector<8x16xf32>, vector<16x16xf32> -> vector<16x16xf32>
    %cst_103 = arith.constant 0.353553385 : f32
    %250 = vector.broadcast %cst_103 : f32 to vector<16x16xf32>
    %251 = arith.mulf %249, %250 : vector<16x16xf32>
    %cst_104 = arith.constant 0xFF800000 : f32
    %252 = vector.broadcast %cst_104 : f32 to vector<16x16xf32>
    %253 = arith.select %9, %251, %252 : vector<16x16xi1>, vector<16x16xf32>
    %cst_105 = arith.constant dense<0xFF800000> : vector<16xf32>
    %254 = vector.multi_reduction <maximumf>, %253, %cst_105 [1] : vector<16x16xf32> to vector<16xf32>
    %255 = vector.shape_cast %254 : vector<16xf32> to vector<16x1xf32>
    %256 = vector.broadcast %255 : vector<16x1xf32> to vector<16x16xf32>
    %257 = arith.subf %253, %256 : vector<16x16xf32>
    %258 = math.exp %257 : vector<16x16xf32>
    %cst_106 = arith.constant dense<0.000000e+00> : vector<16xf32>
    %259 = vector.multi_reduction <add>, %258, %cst_106 [1] : vector<16x16xf32> to vector<16xf32>
    %260 = vector.shape_cast %259 : vector<16xf32> to vector<16x1xf32>
    %261 = tpu.reciprocal %260 {approx = true} : vector<16x1xf32> -> vector<16x1xf32>
    %262 = vector.broadcast %261 : vector<16x1xf32> to vector<16x16xf32>
    %263 = arith.mulf %258, %262 : vector<16x16xf32>
    %cst_107 = arith.constant dense<0.000000e+00> : vector<16x8xf32>
    %264 = tpu.matmul %263, %247, %cst_107 {dimension_numbers = #tpu.dot_dimension_numbers<[1], [0], [0], [1], [0, 0, 1, 1], [], []>} : vector<16x16xf32>, vector<16x8xf32>, vector<16x8xf32> -> vector<16x8xf32>
    %265 = vector.extract_strided_slice %222 {offsets = [0, 16], sizes = [16, 8], strides = [1, 1]} : vector<16x32xf32> to vector<16x8xf32>
    %266 = vector.extract_strided_slice %223 {offsets = [0, 16], sizes = [16, 8], strides = [1, 1]} : vector<16x32xf32> to vector<16x8xf32>
    %267 = vector.extract_strided_slice %224 {offsets = [0, 16], sizes = [16, 8], strides = [1, 1]} : vector<16x32xf32> to vector<16x8xf32>
    %268 = tpu.transpose %266, [1, 0] : vector<16x8xf32> -> vector<8x16xf32>
    %cst_108 = arith.constant dense<0.000000e+00> : vector<16x16xf32>
    %269 = tpu.matmul %265, %268, %cst_108 {dimension_numbers = #tpu.dot_dimension_numbers<[1], [0], [0], [1], [0, 0, 1, 1], [], []>} : vector<16x8xf32>, vector<8x16xf32>, vector<16x16xf32> -> vector<16x16xf32>
    %cst_109 = arith.constant 0.353553385 : f32
    %270 = vector.broadcast %cst_109 : f32 to vector<16x16xf32>
    %271 = arith.mulf %269, %270 : vector<16x16xf32>
    %cst_110 = arith.constant 0xFF800000 : f32
    %272 = vector.broadcast %cst_110 : f32 to vector<16x16xf32>
    %273 = arith.select %9, %271, %272 : vector<16x16xi1>, vector<16x16xf32>
    %cst_111 = arith.constant dense<0xFF800000> : vector<16xf32>
    %274 = vector.multi_reduction <maximumf>, %273, %cst_111 [1] : vector<16x16xf32> to vector<16xf32>
    %275 = vector.shape_cast %274 : vector<16xf32> to vector<16x1xf32>
    %276 = vector.broadcast %275 : vector<16x1xf32> to vector<16x16xf32>
    %277 = arith.subf %273, %276 : vector<16x16xf32>
    %278 = math.exp %277 : vector<16x16xf32>
    %cst_112 = arith.constant dense<0.000000e+00> : vector<16xf32>
    %279 = vector.multi_reduction <add>, %278, %cst_112 [1] : vector<16x16xf32> to vector<16xf32>
    %280 = vector.shape_cast %279 : vector<16xf32> to vector<16x1xf32>
    %281 = tpu.reciprocal %280 {approx = true} : vector<16x1xf32> -> vector<16x1xf32>
    %282 = vector.broadcast %281 : vector<16x1xf32> to vector<16x16xf32>
    %283 = arith.mulf %278, %282 : vector<16x16xf32>
    %cst_113 = arith.constant dense<0.000000e+00> : vector<16x8xf32>
    %284 = tpu.matmul %283, %267, %cst_113 {dimension_numbers = #tpu.dot_dimension_numbers<[1], [0], [0], [1], [0, 0, 1, 1], [], []>} : vector<16x16xf32>, vector<16x8xf32>, vector<16x8xf32> -> vector<16x8xf32>
    %285 = vector.extract_strided_slice %222 {offsets = [0, 24], sizes = [16, 8], strides = [1, 1]} : vector<16x32xf32> to vector<16x8xf32>
    %286 = vector.extract_strided_slice %223 {offsets = [0, 24], sizes = [16, 8], strides = [1, 1]} : vector<16x32xf32> to vector<16x8xf32>
    %287 = vector.extract_strided_slice %224 {offsets = [0, 24], sizes = [16, 8], strides = [1, 1]} : vector<16x32xf32> to vector<16x8xf32>
    %288 = tpu.transpose %286, [1, 0] : vector<16x8xf32> -> vector<8x16xf32>
    %cst_114 = arith.constant dense<0.000000e+00> : vector<16x16xf32>
    %289 = tpu.matmul %285, %288, %cst_114 {dimension_numbers = #tpu.dot_dimension_numbers<[1], [0], [0], [1], [0, 0, 1, 1], [], []>} : vector<16x8xf32>, vector<8x16xf32>, vector<16x16xf32> -> vector<16x16xf32>
    %cst_115 = arith.constant 0.353553385 : f32
    %290 = vector.broadcast %cst_115 : f32 to vector<16x16xf32>
    %291 = arith.mulf %289, %290 : vector<16x16xf32>
    %cst_116 = arith.constant 0xFF800000 : f32
    %292 = vector.broadcast %cst_116 : f32 to vector<16x16xf32>
    %293 = arith.select %9, %291, %292 : vector<16x16xi1>, vector<16x16xf32>
    %cst_117 = arith.constant dense<0xFF800000> : vector<16xf32>
    %294 = vector.multi_reduction <maximumf>, %293, %cst_117 [1] : vector<16x16xf32> to vector<16xf32>
    %295 = vector.shape_cast %294 : vector<16xf32> to vector<16x1xf32>
    %296 = vector.broadcast %295 : vector<16x1xf32> to vector<16x16xf32>
    %297 = arith.subf %293, %296 : vector<16x16xf32>
    %298 = math.exp %297 : vector<16x16xf32>
    %cst_118 = arith.constant dense<0.000000e+00> : vector<16xf32>
    %299 = vector.multi_reduction <add>, %298, %cst_118 [1] : vector<16x16xf32> to vector<16xf32>
    %300 = vector.shape_cast %299 : vector<16xf32> to vector<16x1xf32>
    %301 = tpu.reciprocal %300 {approx = true} : vector<16x1xf32> -> vector<16x1xf32>
    %302 = vector.broadcast %301 : vector<16x1xf32> to vector<16x16xf32>
    %303 = arith.mulf %298, %302 : vector<16x16xf32>
    %cst_119 = arith.constant dense<0.000000e+00> : vector<16x8xf32>
    %304 = tpu.matmul %303, %287, %cst_119 {dimension_numbers = #tpu.dot_dimension_numbers<[1], [0], [0], [1], [0, 0, 1, 1], [], []>} : vector<16x16xf32>, vector<16x8xf32>, vector<16x8xf32> -> vector<16x8xf32>
    %305 = tpu.concatenate %244, %264, %284, %304 in 1 : vector<16x8xf32>, vector<16x8xf32>, vector<16x8xf32>, vector<16x8xf32> -> vector<16x32xf32>
    %c1_120 = arith.constant 1 : index
    %c0_121 = arith.constant 0 : index
    %c0_122 = arith.constant 0 : index
    %306 = vector.load %arg6[%c1_120, %c0_121, %c0_122] : memref<2x32x32xf32, #tpu.memory_space<vmem>>, vector<1x32x32xf32>
    %307 = vector.shape_cast %306 : vector<1x32x32xf32> to vector<32x32xf32>
    %cst_123 = arith.constant dense<0.000000e+00> : vector<16x32xf32>
    %308 = tpu.matmul %305, %307, %cst_123 {dimension_numbers = #tpu.dot_dimension_numbers<[1], [0], [0], [1], [0, 0, 1, 1], [], []>} : vector<16x32xf32>, vector<32x32xf32>, vector<16x32xf32> -> vector<16x32xf32>
    %c1_124 = arith.constant 1 : index
    %c0_125 = arith.constant 0 : index
    %c0_126 = arith.constant 0 : index
    %309 = vector.load %arg7[%c1_124, %c0_125, %c0_126] : memref<2x1x32xf32, #tpu.memory_space<vmem>>, vector<1x1x32xf32>
    %310 = vector.shape_cast %309 : vector<1x1x32xf32> to vector<1x32xf32>
    %311 = vector.broadcast %310 : vector<1x32xf32> to vector<16x32xf32>
    %312 = arith.addf %308, %311 : vector<16x32xf32>
    %313 = arith.addf %188, %312 : vector<16x32xf32>
    %c1_127 = arith.constant 1 : index
    %c0_128 = arith.constant 0 : index
    %c0_129 = arith.constant 0 : index
    %314 = vector.load %arg8[%c1_127, %c0_128, %c0_129] : memref<2x1x32xf32, #tpu.memory_space<vmem>>, vector<1x1x32xf32>
    %315 = vector.shape_cast %314 : vector<1x1x32xf32> to vector<1x32xf32>
    %c1_130 = arith.constant 1 : index
    %c0_131 = arith.constant 0 : index
    %c0_132 = arith.constant 0 : index
    %316 = vector.load %arg9[%c1_130, %c0_131, %c0_132] : memref<2x1x32xf32, #tpu.memory_space<vmem>>, vector<1x1x32xf32>
    %317 = vector.shape_cast %316 : vector<1x1x32xf32> to vector<1x32xf32>
    %cst_133 = arith.constant dense<0.000000e+00> : vector<16xf32>
    %318 = vector.multi_reduction <add>, %313, %cst_133 [1] : vector<16x32xf32> to vector<16xf32>
    %319 = vector.shape_cast %318 : vector<16xf32> to vector<16x1xf32>
    %cst_134 = arith.constant 3.200000e+01 : f32
    %320 = vector.broadcast %cst_134 : f32 to vector<16x1xf32>
    %321 = arith.divf %319, %320 : vector<16x1xf32>
    %322 = vector.broadcast %321 : vector<16x1xf32> to vector<16x32xf32>
    %323 = arith.subf %313, %322 : vector<16x32xf32>
    %324 = arith.mulf %323, %323 : vector<16x32xf32>
    %cst_135 = arith.constant dense<0.000000e+00> : vector<16xf32>
    %325 = vector.multi_reduction <add>, %324, %cst_135 [1] : vector<16x32xf32> to vector<16xf32>
    %326 = vector.shape_cast %325 : vector<16xf32> to vector<16x1xf32>
    %cst_136 = arith.constant 3.200000e+01 : f32
    %327 = vector.broadcast %cst_136 : f32 to vector<16x1xf32>
    %328 = arith.divf %326, %327 : vector<16x1xf32>
    %329 = vector.broadcast %321 : vector<16x1xf32> to vector<16x32xf32>
    %330 = arith.subf %313, %329 : vector<16x32xf32>
    %cst_137 = arith.constant 9.99999974E-6 : f32
    %331 = vector.broadcast %cst_137 : f32 to vector<16x1xf32>
    %332 = arith.addf %328, %331 : vector<16x1xf32>
    %333 = math.rsqrt %332 : vector<16x1xf32>
    %334 = vector.broadcast %333 : vector<16x1xf32> to vector<16x32xf32>
    %335 = arith.mulf %330, %334 : vector<16x32xf32>
    %336 = vector.broadcast %315 : vector<1x32xf32> to vector<16x32xf32>
    %337 = arith.mulf %335, %336 : vector<16x32xf32>
    %338 = vector.broadcast %317 : vector<1x32xf32> to vector<16x32xf32>
    %339 = arith.addf %337, %338 : vector<16x32xf32>
    %c1_138 = arith.constant 1 : index
    %c0_139 = arith.constant 0 : index
    %c0_140 = arith.constant 0 : index
    %340 = vector.load %arg10[%c1_138, %c0_139, %c0_140] : memref<2x32x128xf32, #tpu.memory_space<vmem>>, vector<1x32x128xf32>
    %341 = vector.shape_cast %340 : vector<1x32x128xf32> to vector<32x128xf32>
    %cst_141 = arith.constant dense<0.000000e+00> : vector<16x128xf32>
    %342 = tpu.matmul %339, %341, %cst_141 {dimension_numbers = #tpu.dot_dimension_numbers<[1], [0], [0], [1], [0, 0, 1, 1], [], []>} : vector<16x32xf32>, vector<32x128xf32>, vector<16x128xf32> -> vector<16x128xf32>
    %c1_142 = arith.constant 1 : index
    %c0_143 = arith.constant 0 : index
    %c0_144 = arith.constant 0 : index
    %343 = vector.load %arg11[%c1_142, %c0_143, %c0_144] : memref<2x1x128xf32, #tpu.memory_space<vmem>>, vector<1x1x128xf32>
    %344 = vector.shape_cast %343 : vector<1x1x128xf32> to vector<1x128xf32>
    %345 = vector.broadcast %344 : vector<1x128xf32> to vector<16x128xf32>
    %346 = arith.addf %342, %345 : vector<16x128xf32>
    %cst_145 = arith.constant 5.000000e-01 : f32
    %347 = vector.broadcast %cst_145 : f32 to vector<16x128xf32>
    %348 = arith.mulf %347, %346 : vector<16x128xf32>
    %cst_146 = arith.constant 4.471500e-02 : f32
    %349 = vector.broadcast %cst_146 : f32 to vector<16x128xf32>
    %350 = arith.mulf %349, %346 : vector<16x128xf32>
    %351 = arith.mulf %350, %346 : vector<16x128xf32>
    %352 = arith.mulf %351, %346 : vector<16x128xf32>
    %353 = arith.addf %346, %352 : vector<16x128xf32>
    %cst_147 = arith.constant 0.797884583 : f32
    %354 = vector.broadcast %cst_147 : f32 to vector<16x128xf32>
    %355 = arith.mulf %354, %353 : vector<16x128xf32>
    %356 = math.tanh %355 : vector<16x128xf32>
    %cst_148 = arith.constant 1.000000e+00 : f32
    %357 = vector.broadcast %cst_148 : f32 to vector<16x128xf32>
    %358 = arith.addf %357, %356 : vector<16x128xf32>
    %359 = arith.mulf %348, %358 : vector<16x128xf32>
    %c1_149 = arith.constant 1 : index
    %c0_150 = arith.constant 0 : index
    %c0_151 = arith.constant 0 : index
    %360 = vector.load %arg12[%c1_149, %c0_150, %c0_151] : memref<2x128x32xf32, #tpu.memory_space<vmem>>, vector<1x128x32xf32>
    %361 = vector.shape_cast %360 : vector<1x128x32xf32> to vector<128x32xf32>
    %cst_152 = arith.constant dense<0.000000e+00> : vector<16x32xf32>
    %362 = tpu.matmul %359, %361, %cst_152 {dimension_numbers = #tpu.dot_dimension_numbers<[1], [0], [0], [1], [0, 0, 1, 1], [], []>} : vector<16x128xf32>, vector<128x32xf32>, vector<16x32xf32> -> vector<16x32xf32>
    %c1_153 = arith.constant 1 : index
    %c0_154 = arith.constant 0 : index
    %c0_155 = arith.constant 0 : index
    %363 = vector.load %arg13[%c1_153, %c0_154, %c0_155] : memref<2x1x32xf32, #tpu.memory_space<vmem>>, vector<1x1x32xf32>
    %364 = vector.shape_cast %363 : vector<1x1x32xf32> to vector<1x32xf32>
    %365 = vector.broadcast %364 : vector<1x32xf32> to vector<16x32xf32>
    %366 = arith.addf %362, %365 : vector<16x32xf32>
    %367 = arith.addf %313, %366 : vector<16x32xf32>
    %c0_156 = arith.constant 0 : index
    %c0_157 = arith.constant 0 : index
    %368 = vector.load %arg14[%c0_156, %c0_157] : memref<1x32xf32, #tpu.memory_space<vmem>>, vector<1x32xf32>
    %c0_158 = arith.constant 0 : index
    %c0_159 = arith.constant 0 : index
    %369 = vector.load %arg15[%c0_158, %c0_159] : memref<1x32xf32, #tpu.memory_space<vmem>>, vector<1x32xf32>
    %cst_160 = arith.constant dense<0.000000e+00> : vector<16xf32>
    %370 = vector.multi_reduction <add>, %367, %cst_160 [1] : vector<16x32xf32> to vector<16xf32>
    %371 = vector.shape_cast %370 : vector<16xf32> to vector<16x1xf32>
    %cst_161 = arith.constant 3.200000e+01 : f32
    %372 = vector.broadcast %cst_161 : f32 to vector<16x1xf32>
    %373 = arith.divf %371, %372 : vector<16x1xf32>
    %374 = vector.broadcast %373 : vector<16x1xf32> to vector<16x32xf32>
    %375 = arith.subf %367, %374 : vector<16x32xf32>
    %376 = arith.mulf %375, %375 : vector<16x32xf32>
    %cst_162 = arith.constant dense<0.000000e+00> : vector<16xf32>
    %377 = vector.multi_reduction <add>, %376, %cst_162 [1] : vector<16x32xf32> to vector<16xf32>
    %378 = vector.shape_cast %377 : vector<16xf32> to vector<16x1xf32>
    %cst_163 = arith.constant 3.200000e+01 : f32
    %379 = vector.broadcast %cst_163 : f32 to vector<16x1xf32>
    %380 = arith.divf %378, %379 : vector<16x1xf32>
    %381 = vector.broadcast %373 : vector<16x1xf32> to vector<16x32xf32>
    %382 = arith.subf %367, %381 : vector<16x32xf32>
    %cst_164 = arith.constant 9.99999974E-6 : f32
    %383 = vector.broadcast %cst_164 : f32 to vector<16x1xf32>
    %384 = arith.addf %380, %383 : vector<16x1xf32>
    %385 = math.rsqrt %384 : vector<16x1xf32>
    %386 = vector.broadcast %385 : vector<16x1xf32> to vector<16x32xf32>
    %387 = arith.mulf %382, %386 : vector<16x32xf32>
    %388 = vector.broadcast %368 : vector<1x32xf32> to vector<16x32xf32>
    %389 = arith.mulf %387, %388 : vector<16x32xf32>
    %390 = vector.broadcast %369 : vector<1x32xf32> to vector<16x32xf32>
    %391 = arith.addf %389, %390 : vector<16x32xf32>
    %c0_165 = arith.constant 0 : index
    %c0_166 = arith.constant 0 : index
    %392 = vector.load %arg16[%c0_165, %c0_166] : memref<32x64xf32, #tpu.memory_space<vmem>>, vector<32x64xf32>
    %cst_167 = arith.constant dense<0.000000e+00> : vector<16x64xf32>
    %393 = tpu.matmul %391, %392, %cst_167 {dimension_numbers = #tpu.dot_dimension_numbers<[1], [0], [0], [1], [0, 0, 1, 1], [], []>} : vector<16x32xf32>, vector<32x64xf32>, vector<16x64xf32> -> vector<16x64xf32>
    %c0_168 = arith.constant 0 : index
    %c0_169 = arith.constant 0 : index
    %394 = vector.load %arg17[%c0_168, %c0_169] : memref<1x64xf32, #tpu.memory_space<vmem>>, vector<1x64xf32>
    %395 = vector.broadcast %394 : vector<1x64xf32> to vector<16x64xf32>
    %396 = arith.addf %393, %395 : vector<16x64xf32>
    %c0_170 = arith.constant 0 : index
    %c0_171 = arith.constant 0 : index
    %397 = vector.load %arg19[%c0_170, %c0_171] : memref<16x64xf32, #tpu.memory_space<vmem>>, vector<16x64xf32>
    tpu.vector_store %arg19[%c0_170, %c0_171], %396 {strides = array<i32>} : memref<16x64xf32, #tpu.memory_space<vmem>>, vector<16x64xf32>,
    %cst_172 = arith.constant dense<0xFF800000> : vector<16xf32>
    %398 = vector.multi_reduction <maximumf>, %396, %cst_172 [1] : vector<16x64xf32> to vector<16xf32>
    %399 = vector.shape_cast %398 : vector<16xf32> to vector<16x1xf32>
    %400 = vector.broadcast %399 : vector<16x1xf32> to vector<16x64xf32>
    %401 = arith.subf %396, %400 : vector<16x64xf32>
    %402 = math.exp %401 : vector<16x64xf32>
    %cst_173 = arith.constant dense<0.000000e+00> : vector<16xf32>
    %403 = vector.multi_reduction <add>, %402, %cst_173 [1] : vector<16x64xf32> to vector<16xf32>
    %404 = vector.shape_cast %403 : vector<16xf32> to vector<16x1xf32>
    %405 = math.log %404 : vector<16x1xf32>
    %406 = arith.addf %405, %399 : vector<16x1xf32>
    %c0_174 = arith.constant 0 : index
    %c0_175 = arith.constant 0 : index
    %407 = vector.load %arg18[%c0_174, %c0_175] : memref<16x1xi32, #tpu.memory_space<vmem>>, vector<16x1xi32>
    %408 = tpu.iota {dimensions = array<i32: 1>} : vector<16x64xi32>
    %409 = vector.broadcast %407 : vector<16x1xi32> to vector<16x64xi32>
    %410 = arith.cmpi eq, %408, %409 : vector<16x64xi32>
    %cst_176 = arith.constant 0.000000e+00 : f32
    %411 = vector.broadcast %cst_176 : f32 to vector<16x64xf32>
    %412 = arith.select %410, %396, %411 : vector<16x64xi1>, vector<16x64xf32>
    %cst_177 = arith.constant dense<0.000000e+00> : vector<16xf32>
    %413 = vector.multi_reduction <add>, %412, %cst_177 [1] : vector<16x64xf32> to vector<16xf32>
    %414 = vector.shape_cast %413 : vector<16xf32> to vector<16x1xf32>
    %415 = arith.subf %406, %414 : vector<16x1xf32>
    %416 = vector.shape_cast %415 : vector<16x1xf32> to vector<1x16x1xf32>
    %cst_178 = arith.constant dense<0.000000e+00> : vector<1xf32>
    %417 = vector.multi_reduction <add>, %416, %cst_178 [1, 2] : vector<1x16x1xf32> to vector<1xf32>
    %418 = vector.shape_cast %417 : vector<1xf32> to vector<1x1x1xf32>
    %419 = vector.extract %418[0, 0, 0] : f32 from vector<1x1x1xf32>
    %c0_179 = arith.constant 0 : index
    %c0_180 = arith.constant 0 : index
    %420 = memref.load %arg20[%c0_179, %c0_180] : memref<1x1xf32, #tpu.memory_space<smem>>
    memref.store %419, %arg20[%c0_179, %c0_180] : memref<1x1xf32, #tpu.memory_space<smem>>
    return
  }
  func.func @transform_0(%arg0: i32) -> (i32, i32) {
    %c0_i32 = arith.constant 0 : i32
    %c0_i32_0 = arith.constant 0 : i32
    %c0_i32_1 = arith.constant 0 : i32
    return %c0_i32, %c0_i32_0 : i32, i32
  }
  func.func @transform_1(%arg0: i32) -> (i32, i32, i32) {
    %c0_i32 = arith.constant 0 : i32
    %c0_i32_0 = arith.constant 0 : i32
    %c0_i32_1 = arith.constant 0 : i32
    %c0_i32_2 = arith.constant 0 : i32
    return %c0_i32, %c0_i32_0, %c0_i32_1 : i32, i32, i32
  }
  func.func @transform_2(%arg0: i32) -> (i32, i32, i32) {
    %c0_i32 = arith.constant 0 : i32
    %c0_i32_0 = arith.constant 0 : i32
    %c0_i32_1 = arith.constant 0 : i32
    %c0_i32_2 = arith.constant 0 : i32
    return %c0_i32, %c0_i32_0, %c0_i32_1 : i32, i32, i32
  }
  func.func @transform_3(%arg0: i32) -> (i32, i32, i32) {
    %c0_i32 = arith.constant 0 : i32
    %c0_i32_0 = arith.constant 0 : i32
    %c0_i32_1 = arith.constant 0 : i32
    %c0_i32_2 = arith.constant 0 : i32
    return %c0_i32, %c0_i32_0, %c0_i32_1 : i32, i32, i32
  }
  func.func @transform_4(%arg0: i32) -> (i32, i32, i32) {
    %c0_i32 = arith.constant 0 : i32
    %c0_i32_0 = arith.constant 0 : i32
    %c0_i32_1 = arith.constant 0 : i32
    %c0_i32_2 = arith.constant 0 : i32
    return %c0_i32, %c0_i32_0, %c0_i32_1 : i32, i32, i32
  }
  func.func @transform_5(%arg0: i32) -> (i32, i32, i32) {
    %c0_i32 = arith.constant 0 : i32
    %c0_i32_0 = arith.constant 0 : i32
    %c0_i32_1 = arith.constant 0 : i32
    %c0_i32_2 = arith.constant 0 : i32
    return %c0_i32, %c0_i32_0, %c0_i32_1 : i32, i32, i32
  }
  func.func @transform_6(%arg0: i32) -> (i32, i32, i32) {
    %c0_i32 = arith.constant 0 : i32
    %c0_i32_0 = arith.constant 0 : i32
    %c0_i32_1 = arith.constant 0 : i32
    %c0_i32_2 = arith.constant 0 : i32
    return %c0_i32, %c0_i32_0, %c0_i32_1 : i32, i32, i32
  }
  func.func @transform_7(%arg0: i32) -> (i32, i32, i32) {
    %c0_i32 = arith.constant 0 : i32
    %c0_i32_0 = arith.constant 0 : i32
    %c0_i32_1 = arith.constant 0 : i32
    %c0_i32_2 = arith.constant 0 : i32
    return %c0_i32, %c0_i32_0, %c0_i32_1 : i32, i32, i32
  }
  func.func @transform_8(%arg0: i32) -> (i32, i32, i32) {
    %c0_i32 = arith.constant 0 : i32
    %c0_i32_0 = arith.constant 0 : i32
    %c0_i32_1 = arith.constant 0 : i32
    %c0_i32_2 = arith.constant 0 : i32
    return %c0_i32, %c0_i32_0, %c0_i32_1 : i32, i32, i32
  }
  func.func @transform_9(%arg0: i32) -> (i32, i32, i32) {
    %c0_i32 = arith.constant 0 : i32
    %c0_i32_0 = arith.constant 0 : i32
    %c0_i32_1 = arith.constant 0 : i32
    %c0_i32_2 = arith.constant 0 : i32
    return %c0_i32, %c0_i32_0, %c0_i32_1 : i32, i32, i32
  }
  func.func @transform_10(%arg0: i32) -> (i32, i32, i32) {
    %c0_i32 = arith.constant 0 : i32
    %c0_i32_0 = arith.constant 0 : i32
    %c0_i32_1 = arith.constant 0 : i32
    %c0_i32_2 = arith.constant 0 : i32
    return %c0_i32, %c0_i32_0, %c0_i32_1 : i32, i32, i32
  }
  func.func @transform_11(%arg0: i32) -> (i32, i32, i32) {
    %c0_i32 = arith.constant 0 : i32
    %c0_i32_0 = arith.constant 0 : i32
    %c0_i32_1 = arith.constant 0 : i32
    %c0_i32_2 = arith.constant 0 : i32
    return %c0_i32, %c0_i32_0, %c0_i32_1 : i32, i32, i32
  }
  func.func @transform_12(%arg0: i32) -> (i32, i32, i32) {
    %c0_i32 = arith.constant 0 : i32
    %c0_i32_0 = arith.constant 0 : i32
    %c0_i32_1 = arith.constant 0 : i32
    %c0_i32_2 = arith.constant 0 : i32
    return %c0_i32, %c0_i32_0, %c0_i32_1 : i32, i32, i32
  }
  func.func @transform_13(%arg0: i32) -> (i32, i32) {
    %c0_i32 = arith.constant 0 : i32
    %c0_i32_0 = arith.constant 0 : i32
    %c0_i32_1 = arith.constant 0 : i32
    return %c0_i32, %c0_i32_0 : i32, i32
  }
  func.func @transform_14(%arg0: i32) -> (i32, i32) {
    %c0_i32 = arith.constant 0 : i32
    %c0_i32_0 = arith.constant 0 : i32
    %c0_i32_1 = arith.constant 0 : i32
    return %c0_i32, %c0_i32_0 : i32, i32
  }
  func.func @transform_15(%arg0: i32) -> (i32, i32) {
    %c0_i32 = arith.constant 0 : i32
    %c0_i32_0 = arith.constant 0 : i32
    %c0_i32_1 = arith.constant 0 : i32
    return %c0_i32, %c0_i32_0 : i32, i32
  }
  func.func @transform_16(%arg0: i32) -> (i32, i32) {
    %c0_i32 = arith.constant 0 : i32
    %c0_i32_0 = arith.constant 0 : i32
    %c0_i32_1 = arith.constant 0 : i32
    return %c0_i32, %c0_i32_0 : i32, i32
  }
  func.func @transform_17(%arg0: i32) -> (i32, i32) {
    %c0_i32 = arith.constant 0 : i32
    %c0_i32_0 = arith.constant 0 : i32
    %c0_i32_1 = arith.constant 0 : i32
    return %c0_i32, %c0_i32_0 : i32, i32
  }
  func.func @transform_18(%arg0: i32) -> (i32, i32) {
    %c0_i32 = arith.constant 0 : i32
    %c0_i32_0 = arith.constant 0 : i32
    %c0_i32_1 = arith.constant 0 : i32
    return %c0_i32, %c0_i32_0 : i32, i32
  }
  func.func @transform_19(%arg0: i32) -> (i32, i32) {
    %c0_i32 = arith.constant 0 : i32
    %c0_i32_0 = arith.constant 0 : i32
    %c0_i32_1 = arith.constant 0 : i32
    return %c0_i32, %c0_i32_0 : i32, i32
  }
}

</mosaic_0001>

<bundles_post_ra>
// kernel: gpt_forward.1
= control target key start
LH: loop header
LB: loop body
LE: loop exit
PB: predicated region body
PF: predicated region fallthrough
CT: control target
= control target key end

     0   :  { %s4392_s0 = inlined_call_operand.vmem [shape: f32[16,32], index: 0, kind: input, shape index: {}]   ;;  %s4393_s1 = inlined_call_operand.vmem [shape: f32[2,1,32], index: 1, kind: input, shape index: {}]   ;;  %s4394_s2 = inlined_call_operand.vmem [shape: f32[2,1,32], index: 2, kind: input, shape index: {}]   ;;  %s4395_s3 = inlined_call_operand.vmem [shape: f32[2,32,96], index: 3, kind: input, shape index: {}]   ;;  %s4396_s4 = inlined_call_operand.vmem [shape: f32[2,1,96], index: 4, kind: input, shape index: {}]   ;;  %s4397_s5 = inlined_call_operand.vmem [shape: f32[2,32,32], index: 5, kind: input, shape index: {}]   ;;  %s4398_s6 = inlined_call_operand.vmem [shape: f32[2,1,32], index: 6, kind: input, shape index: {}]   ;;  %s4399_s7 = inlined_call_operand.vmem [shape: f32[2,1,32], index: 7, kind: input, shape index: {}]   ;;  %s4400_s8 = inlined_call_operand.vmem [shape: f32[2,1,32], index: 8, kind: input, shape index: {}]   ;;  %s4401_s9 = inlined_call_operand.vmem [shape: f32[2,32,128], index: 9, kind: input, shape index: {}]   ;;  %s4402_s10 = inlined_call_operand.vmem [shape: f32[2,1,128], index: 10, kind: input, shape index: {}]   ;;  %s4403_s11 = inlined_call_operand.vmem [shape: f32[2,128,32], index: 11, kind: input, shape index: {}]   ;;  %s4404_s12 = inlined_call_operand.vmem [shape: f32[2,1,32], index: 12, kind: input, shape index: {}]   ;;  %s4405_s13 = inlined_call_operand.vmem [shape: f32[1,32], index: 13, kind: input, shape index: {}]   ;;  %s4406_s14 = inlined_call_operand.vmem [shape: f32[1,32], index: 14, kind: input, shape index: {}]   ;;  %s4407_s15 = inlined_call_operand.vmem [shape: f32[32,64], index: 15, kind: input, shape index: {}]   ;;  %s4408_s16 = inlined_call_operand.vmem [shape: f32[1,64], index: 16, kind: input, shape index: {}]   ;;  %s4409_s17 = inlined_call_operand.vmem [shape: s32[16,1], index: 17, kind: input, shape index: {}]   ;;  %s4410_s18 = inlined_call_operand.hbm [shape: f32[16,64], index: 18, kind: output, shape index: {0}]   ;;  %s4411_s19 = inlined_call_operand.hbm [shape: f32[1,1], index: 19, kind: output, shape index: {1}]  }
   0x1   :  { %4436 = sst [smem:[#allocation8_spill]] %s4392_s0 }
   0x2   :  { %4437 = sst [smem:[#allocation9_spill]] %s4393_s1 }
   0x3   :  { %4438 = sst [smem:[#allocation10_spill]] %s4394_s2 }
   0x4   :  { %4439 = sst [smem:[#allocation11_spill]] %s4395_s3 }
   0x5   :  { %25 = vsyncpa [#allocation3], 0  ;;  %s4440_s20 = sld [smem:[#allocation8_spill]]  ;;  %vm81_vm0 = vcmask 261120  }
   0xb   :  { %v3772_v0 = vld [vmem:[%s4440_s20] sm:$0xff]  ;;  %v3777_v1 = vld [vmem:[%s4440_s20 + $0x8] sm:$0xff] }
   0xc   :  { %26 = vsyncpa [#allocation4], 0  ;;  %v82_v2 = vsel %vm81_vm0, %v3772_v0, 0.0  ;;  %v85_v3 = vsel %vm81_vm0, %v3777_v1, 0.0  ;;  %s4441_s23 = sld [smem:[#allocation11_spill]]  ;;  %vm223_vm1 = vcmask 64512   ;;  %v65_v41 = vlaneseq }
   0xd   :  { %83 = vadd.xlane.f32.xlu0 %v82_v2  ;;  %s4442_s30 = sld [smem:[#allocation9_spill]]  ;;  %v2981_v34 = vld [vmem:[%s4396_s4] ss:$0 sm:$0xff]  ;;  %s3651_s24 = smov 96   ;;  %vm311_vm7 = vcmask 130048   ;;  %vm1061_vm9 = vcmask 195584  }
   0xe   :  { %s4443_s1 = sld [smem:[#allocation10_spill]]  ;;  %v66_v42 = vshrl.u32 %v65_v41, 7  ;;  %v3826_v44 = vand.u32 127, %v65_v41  ;;  %s3652_s25 = smov 64   ;;  %vm2888_vm10 = vcmask 523264   ;;  %vm2935_vm13 = vcmask 7168  }
   0xf   :  { %s3653_s3 = smov 88   ;;  %s3654_s26 = smov 120  }
  0x10   :  { %v67_v43 = vadd.s32 8, %v66_v42  ;;  %v72_v46 = vshra.s32 %v3826_v44, 3  ;;  %v70_v47 = vshra.s32 %v66_v42, 3  ;;  %vm75_vm5 = vcmp.le.s32.totalorder %v3826_v44, %v66_v42  ;;  %s4428_s27 = smov 56   ;;  %s4432_s28 = smov 80  }
  0x11   :  { %86 = vadd.xlane.f32.xlu0 %v85_v3  ;;  %s4430_s29 = smov 112   ;;  %s4426_s0 = smov 48  }
  0x12   :  { %v128_v14 = vld [vmem:[%s4441_s23 + $0x18] sm:$0xff]  ;;  %v127_v15 = vld [vmem:[%s4441_s23 + $0x10] sm:$0xff]  ;;  %v126_v16 = vld [vmem:[%s4441_s23 + $0x8] sm:$0xff]  ;;  %v71_v45 = vshra.s32 %v67_v43, 3  ;;  %vm76_vm3 = vcmp.le.s32.totalorder %v3826_v44, %v67_v43  ;;  %vm73_vm4 = vcmp.eq.s32.totalorder %v70_v47, %v72_v46  ;;  %s4424_s20 = smov 72   ;;  %s4416_s21 = smov 104  }
  0x13   :  { %3238 = vmatprep.subr.mxu1 %v128_v14  ;;  %v125_v17 = vld [vmem:[%s4441_s23] sm:$0xff]  ;;  %vm3835_vm8 = vmand %vm73_vm4, %vm75_vm5  ;;  %s4422_s22 = smov 40   ;;  %s4418_s2 = smov 8  }
  0x14   :  { %3239 = vmatpush3.msra.mxu1 %v128_v14  ;;  %v2979_v25 = vld [vmem:[%s4442_s30] ss:$0 sm:$0xff]  ;;  %vm74_vm2 = vcmp.eq.s32.totalorder %v71_v45, %v72_v46 }
  0x15   :  { %3240 = vmatprep.subr.mxu1 %v127_v15  ;;  %v2980_v27 = vld [vmem:[%s4443_s1] ss:$0 sm:$0xff]  ;;  %vm3831_vm6 = vmand %vm74_vm2, %vm76_vm3 }
  0x16   :  { %3241 = vmatpush3.msra.mxu1 %v127_v15 }
  0x17   :  { %3242 = vmatprep.subr.mxu1 %v126_v16 }
  0x18   :  { %3243 = vmatpush3.msra.mxu1 %v126_v16 }
  0x19   :  { %3244 = vmatprep.subr.mxu1 %v125_v17 }
  0x1a   :  { %3245 = vmatpush3.msra.mxu1 %v125_v17 }
  0x96   :  { %v84_v4 = vpop.xlane.xlu0 %83 }
  0x97   :  { %v89_v5 = vmul.f32 0.03125, %v84_v4 }
  0x99   :  { %v91_v6 = vsub.f32 %v3772_v0, %v89_v5 }
  0x9a   :  { %v87_v7 = vpop.xlane.xlu0 %86 }
  0x9b   :  { %v90_v8 = vmul.f32 0.03125, %v87_v7  ;;  %v93_v9 = vmul.f32 %v91_v6, %v91_v6 }
  0x9d   :  { %v92_v10 = vsub.f32 %v3777_v1, %v90_v8  ;;  %v95_v11 = vsel %vm81_vm0, %v93_v9, 0.0 }
  0x9e   :  { %96 = vadd.xlane.f32.xlu1 %v95_v11 }
  0x9f   :  { %v94_v12 = vmul.f32 %v92_v10, %v92_v10 }
  0xa1   :  { %v98_v13 = vsel %vm81_vm0, %v94_v12, 0.0 }
  0xa2   :  { %99 = vadd.xlane.f32.xlu1 %v98_v13 }
 0x127   :  { %v97_v18 = vpop.xlane.xlu1 %96 }
 0x128   :  { %v101_v19 = vmul.f32 0.03125, %v97_v18 }
 0x12a   :  { %v103_v20 = vadd.f32 1e-05, %v101_v19 }
 0x12b   :  { %v100_v21 = vpop.xlane.xlu1 %99 }
 0x12c   :  { %3519 = vrsqrt.f32 %v103_v20  ;;  %v102_v22 = vmul.f32 0.03125, %v100_v21 }
 0x12e   :  { %v104_v23 = vadd.f32 1e-05, %v102_v22 }
 0x130   :  { %3521 = vrsqrt.f32 %v104_v23 }
 0x139   :  { %v3520_v24 = vpop.eup %3519 }
 0x13a   :  { %v107_v26 = vmul.f32 %v3520_v24, %v91_v6 }
 0x13c   :  { %v115_v28 = vmul.f32 %v2979_v25, %v107_v26 }
 0x13d   :  { %v3522_v29 = vpop.eup %3521 }
 0x13e   :  { %v108_v30 = vmul.f32 %v3522_v29, %v92_v10  ;;  %v123_v31 = vadd.f32 %v2980_v27, %v115_v28 }
 0x140   :  { %v116_v32 = vmul.f32 %v2979_v25, %v108_v30  ;;  %3246 = vmatprep.mubr.msk.f32.mxu1 %vm81_vm0, %v123_v31 }
 0x142   :  { %v124_v33 = vadd.f32 %v2980_v27, %v116_v32 }
 0x144   :  { %3247 = vmatmul.mubr.msk.f32.vlgmr.msra.gmra.mxu1 %vm81_vm0, %v124_v33 }
 0x204   :  { %v3248_v35 = vpop.f32.mrf.mxu1 }
 0x205   :  { %v3810_v36 = vadd.f32 %v3248_v35, %v2981_v34 }
 0x206   :  { %v208_v37 = vpop.f32.mrf.mxu1 }
 0x207   :  { %v3812_v38 = vadd.f32 %v2981_v34, %v208_v37  ;;  %221 = vrot.lane.b32.xlu0 %v3810_v36, %s3651_s24 }
 0x209   :  { %219 = vrot.lane.b32.xlu1 %v3812_v38, %s3651_s24  ;;  %3253 = vmatprep.mubr.msk.f32.mxu1 %vm223_vm1, %v3812_v38 }
 0x279   :  { %v222_v39 = vpop.permute.xlu0 %221 }
 0x27a   :  { %3249 = vmatprep.subr.msk.mxu1 %vm223_vm1, %v222_v39 }
 0x27b   :  { %3250 = vmatpush3.xpose.msk.msra.mxu1 %vm223_vm1, %v222_v39  ;;  %v220_v40 = vpop.permute.xlu1 %219 }
 0x27c   :  { %3251 = vmatprep.subr.msk.mxu1 %vm223_vm1, %v220_v40 }
 0x27f   :  { %3252 = vmatpush3.xpose.msk.msra.mxu1 %vm223_vm1, %v220_v40 }
 0x282   :  { %3254 = vmatmul.mubr.msk.f32.vlgmr.msra.gmra.mxu1 %vm223_vm1, %v3810_v36 }
 0x342   :  { %v3255_v48 = vpop.f32.mrf.mxu1 }
 0x343   :  { %v308_v50 = vmul.f32 0.35355338, %v3255_v48 }
 0x344   :  { %v298_v51 = vpop.f32.mrf.mxu1 }
 0x345   :  { %v307_v53 = vmul.f32 0.35355338, %v298_v51  ;;  %v310_v54 = vsel %vm3831_vm6, %v308_v50, -inf }
 0x346   :  { %v315_v55 = vsel %vm311_vm7, %v310_v54, -inf }
 0x347   :  { %316 = vmax.xlane.f32.xlu0 %v315_v55  ;;  %v309_v56 = vsel %vm3835_vm8, %v307_v53, -inf }
 0x348   :  { %v312_v57 = vsel %vm311_vm7, %v309_v56, -inf }
 0x349   :  { %313 = vmax.xlane.f32.xlu1 %v312_v57 }
 0x3d0   :  { %v317_v58 = vpop.xlane.xlu0 %316 }
 0x3d1   :  { %v319_v59 = vsub.f32 %v310_v54, %v317_v58 }
 0x3d2   :  { %v314_v60 = vpop.xlane.xlu1 %313 }
 0x3d3   :  { %v322_v61 = vmul.f32 1.442695, %v319_v59  ;;  %v318_v62 = vsub.f32 %v309_v56, %v314_v60 }
 0x3d5   :  { %3523 = vpow2.f32 %v322_v61  ;;  %v320_v63 = vmul.f32 1.442695, %v318_v62 }
 0x3d7   :  { %3525 = vpow2.f32 %v320_v63 }
 0x3e2   :  { %v3524_v2 = vpop.eup %3523 }
 0x3e3   :  { %v327_v3 = vsel %vm311_vm7, %v3524_v2, 0.0 }
 0x3e4   :  { %v3526_v4 = vpop.eup %3525  ;;  %328 = vadd.xlane.f32.xlu1 %v327_v3 }
 0x3e5   :  { %v324_v5 = vsel %vm311_vm7, %v3526_v4, 0.0 }
 0x3e6   :  { %325 = vadd.xlane.f32.xlu0 %v324_v5 }
 0x3f5   :  { %334 = vrot.lane.b32.xlu1 %v3812_v38, %s3652_s25 }
 0x3f9   :  { %427 = vrot.lane.b32.xlu1 %v3810_v36, %s3653_s3 }
 0x3fc   :  { %336 = vrot.lane.b32.xlu0 %v3810_v36, %s3652_s25 }
 0x3fd   :  { %425 = vrot.lane.b32.xlu1 %v3812_v38, %s3653_s3 }
 0x400   :  { %421 = vrot.lane.b32.xlu0 %v3812_v38, %s3654_s26 }
 0x401   :  { %423 = vrot.lane.b32.xlu1 %v3810_v36, %s3654_s26 }
 0x46d   :  { %v329_v6 = vpop.xlane.xlu1 %328 }
 0x46e   :  { %3527 = vrcp.f32 %v329_v6 }
 0x46f   :  { %v326_v7 = vpop.xlane.xlu0 %325 }
 0x470   :  { %3529 = vrcp.f32 %v326_v7 }
 0x471   :  { %v335_v8 = vpop.permute.xlu1 %334 }
 0x473   :  { %v337_v9 = vpop.permute.xlu0 %336 }
 0x474   :  { %3256 = vmatprep.subr.mxu1 %v337_v9 }
 0x475   :  { %3257 = vmatpush3.msra.mxu1 %v337_v9  ;;  %v428_v10 = vpop.permute.xlu1 %427 }
 0x476   :  { %3258 = vmatprep.subr.mxu1 %v335_v8 }
 0x477   :  { %3259 = vmatpush3.msra.mxu1 %v335_v8  ;;  %v422_v15 = vpop.permute.xlu0 %421 }
 0x478   :  { %3263 = vmatprep.subr.msk.mxu1 %vm223_vm1, %v428_v10 }
 0x479   :  { %v426_v16 = vpop.permute.xlu1 %425 }
 0x47b   :  { %v3528_v11 = vpop.eup %3527 }
 0x47c   :  { %v333_v14 = vmul.f32 %v3528_v11, %v3524_v2 }
 0x47d   :  { %v3530_v12 = vpop.eup %3529  ;;  %v424_v17 = vpop.permute.xlu1 %423 }
 0x47e   :  { %v332_v13 = vmul.f32 %v3530_v12, %v3526_v4 }
 0x480   :  { %3260 = vmatprep.mubr.msk.f32.mxu1 %vm311_vm7, %v332_v13 }
 0x481   :  { %3261 = vmatmul.mubr.msk.f32.vlgmr.msra.gmra.mxu1 %vm311_vm7, %v333_v14 }
 0x482   :  { %3264 = vmatpush3.xpose.msk.msra.mxu1 %vm223_vm1, %v428_v10  ;;  %3267 = vmatprep.mubr.msk.f32.mxu1 %vm223_vm1, %v422_v15 }
 0x483   :  { %3265 = vmatprep.subr.msk.mxu1 %vm223_vm1, %v426_v16 }
 0x486   :  { %3266 = vmatpush3.xpose.msk.msra.mxu1 %vm223_vm1, %v426_v16 }
 0x489   :  { %3268 = vmatmul.mubr.msk.f32.vlgmr.msra.gmra.mxu1 %vm223_vm1, %v424_v17 }
 0x541   :  { %v3867_v18 = vpop.f32.mrf.mxu1 }
 0x543   :  { %v3869_v19 = vpop.f32.mrf.mxu1 }
 0x549   :  { %v3269_v20 = vpop.f32.mrf.mxu1 }
 0x54a   :  { %v513_v21 = vmul.f32 0.35355338, %v3269_v20 }
 0x54b   :  { %v503_v22 = vpop.f32.mrf.mxu1 }
 0x54c   :  { %v512_v23 = vmul.f32 0.35355338, %v503_v22  ;;  %v515_v24 = vsel %vm3831_vm6, %v513_v21, -inf }
 0x54d   :  { %v519_v25 = vsel %vm311_vm7, %v515_v24, -inf }
 0x54e   :  { %520 = vmax.xlane.f32.xlu1 %v519_v25  ;;  %v514_v26 = vsel %vm3835_vm8, %v512_v23, -inf }
 0x54f   :  { %v516_v27 = vsel %vm311_vm7, %v514_v26, -inf }
 0x550   :  { %517 = vmax.xlane.f32.xlu0 %v516_v27 }
 0x55f   :  { %538 = vrot.lane.b32.xlu1 %v3812_v38, %s4428_s27 }
 0x563   :  { %631 = vrot.lane.b32.xlu1 %v3810_v36, %s4432_s28 }
 0x567   :  { %629 = vrot.lane.b32.xlu1 %v3812_v38, %s4432_s28 }
 0x56b   :  { %627 = vrot.lane.b32.xlu1 %v3810_v36, %s4430_s29 }
 0x5d7   :  { %v521_v28 = vpop.xlane.xlu1 %520 }
 0x5d8   :  { %v523_v29 = vsub.f32 %v515_v24, %v521_v28 }
 0x5d9   :  { %v518_v30 = vpop.xlane.xlu0 %517 }
 0x5da   :  { %v526_v31 = vmul.f32 1.442695, %v523_v29  ;;  %v522_v32 = vsub.f32 %v514_v26, %v518_v30 }
 0x5db   :  { %v539_v42 = vpop.permute.xlu1 %538 }
 0x5dc   :  { %3531 = vpow2.f32 %v526_v31  ;;  %v524_v33 = vmul.f32 1.442695, %v522_v32 }
 0x5de   :  { %3533 = vpow2.f32 %v524_v33 }
 0x5df   :  { %v632_v45 = vpop.permute.xlu1 %631 }
 0x5e3   :  { %v630_v53 = vpop.permute.xlu1 %629 }
 0x5e7   :  { %v628_v54 = vpop.permute.xlu1 %627 }
 0x5e9   :  { %v3532_v34 = vpop.eup %3531 }
 0x5ea   :  { %v531_v35 = vsel %vm311_vm7, %v3532_v34, 0.0 }
 0x5eb   :  { %v3534_v37 = vpop.eup %3533  ;;  %532 = vadd.xlane.f32.xlu0 %v531_v35 }
 0x5ec   :  { %v528_v39 = vsel %vm311_vm7, %v3534_v37, 0.0 }
 0x5ef   :  { %529 = vadd.xlane.f32.xlu0 %v528_v39 }
 0x605   :  { %540 = vrot.lane.b32.xlu0 %v3810_v36, %s4428_s27  ;;  %s4456_s27 = smov 16  }
 0x609   :  { %625 = vrot.lane.b32.xlu0 %v3812_v38, %s4430_s29 }
 0x674   :  { %v533_v40 = vpop.xlane.xlu0 %532 }
 0x675   :  { %3535 = vrcp.f32 %v533_v40 }
 0x678   :  { %v530_v41 = vpop.xlane.xlu0 %529 }
 0x679   :  { %3537 = vrcp.f32 %v530_v41 }
 0x67c   :  { %v541_v43 = vpop.permute.xlu0 %540 }
 0x67d   :  { %3270 = vmatprep.subr.mxu0 %v541_v43 }
 0x67e   :  { %3271 = vmatpush3.msra.mxu0 %v541_v43 }
 0x67f   :  { %3272 = vmatprep.subr.mxu0 %v539_v42 }
 0x680   :  { %3273 = vmatpush3.msra.mxu0 %v539_v42  ;;  %v626_v51 = vpop.permute.xlu0 %625 }
 0x681   :  { %3277 = vmatprep.subr.msk.mxu0 %vm223_vm1, %v632_v45 }
 0x682   :  { %v3536_v46 = vpop.eup %3535 }
 0x683   :  { %v537_v50 = vmul.f32 %v3536_v46, %v3532_v34 }
 0x686   :  { %v3538_v47 = vpop.eup %3537 }
 0x687   :  { %v536_v48 = vmul.f32 %v3538_v47, %v3534_v37 }
 0x689   :  { %3274 = vmatprep.mubr.msk.f32.mxu0 %vm311_vm7, %v536_v48 }
 0x68a   :  { %3275 = vmatmul.mubr.msk.f32.vlgmr.msra.gmra.mxu0 %vm311_vm7, %v537_v50 }
 0x68b   :  { %3278 = vmatpush3.xpose.msk.msra.mxu0 %vm223_vm1, %v632_v45  ;;  %3281 = vmatprep.mubr.msk.f32.mxu0 %vm223_vm1, %v626_v51 }
 0x68c   :  { %3279 = vmatprep.subr.msk.mxu0 %vm223_vm1, %v630_v53 }
 0x68f   :  { %3280 = vmatpush3.xpose.msk.msra.mxu0 %vm223_vm1, %v630_v53 }
 0x692   :  { %3282 = vmatmul.mubr.msk.f32.vlgmr.msra.gmra.mxu0 %vm223_vm1, %v628_v54 }
 0x74a   :  { %v3899_v55 = vpop.f32.mrf.mxu0 }
 0x74c   :  { %v3901_v56 = vpop.f32.mrf.mxu0 }
 0x752   :  { %v3283_v57 = vpop.f32.mrf.mxu0 }
 0x753   :  { %v717_v58 = vmul.f32 0.35355338, %v3283_v57 }
 0x754   :  { %v707_v59 = vpop.f32.mrf.mxu0 }
 0x755   :  { %v716_v60 = vmul.f32 0.35355338, %v707_v59  ;;  %v719_v61 = vsel %vm3831_vm6, %v717_v58, -inf  ;;  %v1066_v59 = vld [vmem:[%s4397_s5 + $0x10] sm:$0xff] }
 0x756   :  { %v723_v62 = vsel %vm311_vm7, %v719_v61, -inf }
 0x757   :  { %724 = vmax.xlane.f32.xlu1 %v723_v62  ;;  %v718_v63 = vsel %vm3835_vm8, %v716_v60, -inf  ;;  %v1065_v60 = vld [vmem:[%s4397_s5 + $0x8] sm:$0xff] }
 0x758   :  { %v720_v2 = vsel %vm311_vm7, %v718_v63, -inf }
 0x759   :  { %721 = vmax.xlane.f32.xlu0 %v720_v2 }
 0x768   :  { %742 = vrot.lane.b32.xlu1 %v3812_v38, %s4426_s0 }
 0x76c   :  { %835 = vrot.lane.b32.xlu1 %v3810_v36, %s4424_s20 }
 0x770   :  { %833 = vrot.lane.b32.xlu1 %v3812_v38, %s4424_s20 }
 0x774   :  { %831 = vrot.lane.b32.xlu1 %v3810_v36, %s4416_s21 }
 0x7e0   :  { %v725_v3 = vpop.xlane.xlu1 %724 }
 0x7e1   :  { %v727_v4 = vsub.f32 %v719_v61, %v725_v3  ;;  %v1064_v61 = vld [vmem:[%s4397_s5] sm:$0xff] }
 0x7e2   :  { %v722_v5 = vpop.xlane.xlu0 %721 }
 0x7e3   :  { %v730_v6 = vmul.f32 1.442695, %v727_v4  ;;  %v726_v7 = vsub.f32 %v718_v63, %v722_v5 }
 0x7e4   :  { %v743_v15 = vpop.permute.xlu1 %742 }
 0x7e5   :  { %3539 = vpow2.f32 %v730_v6  ;;  %v728_v8 = vmul.f32 1.442695, %v726_v7 }
 0x7e7   :  { %3541 = vpow2.f32 %v728_v8 }
 0x7e8   :  { %v836_v17 = vpop.permute.xlu1 %835 }
 0x7ec   :  { %v834_v25 = vpop.permute.xlu1 %833 }
 0x7f0   :  { %v832_v26 = vpop.permute.xlu1 %831 }
 0x7f2   :  { %v3540_v9 = vpop.eup %3539 }
 0x7f3   :  { %v735_v10 = vsel %vm311_vm7, %v3540_v9, 0.0 }
 0x7f4   :  { %v3542_v11 = vpop.eup %3541  ;;  %736 = vadd.xlane.f32.xlu0 %v735_v10 }
 0x7f5   :  { %v732_v12 = vsel %vm311_vm7, %v3542_v11, 0.0 }
 0x7f8   :  { %733 = vadd.xlane.f32.xlu0 %v732_v12 }
 0x80e   :  { %744 = vrot.lane.b32.xlu0 %v3810_v36, %s4426_s0 }
 0x812   :  { %829 = vrot.lane.b32.xlu0 %v3812_v38, %s4416_s21  ;;  %s4420_s21 = smov 16  }
 0x87d   :  { %v737_v13 = vpop.xlane.xlu0 %736 }
 0x87e   :  { %3543 = vrcp.f32 %v737_v13 }
 0x881   :  { %v734_v14 = vpop.xlane.xlu0 %733 }
 0x882   :  { %3545 = vrcp.f32 %v734_v14 }
 0x885   :  { %v745_v16 = vpop.permute.xlu0 %744 }
 0x886   :  { %3284 = vmatprep.subr.mxu1 %v745_v16 }
 0x887   :  { %3285 = vmatpush3.msra.mxu1 %v745_v16 }
 0x888   :  { %3286 = vmatprep.subr.mxu1 %v743_v15 }
 0x889   :  { %3287 = vmatpush3.msra.mxu1 %v743_v15  ;;  %v830_v24 = vpop.permute.xlu0 %829 }
 0x88a   :  { %3291 = vmatprep.subr.msk.mxu1 %vm223_vm1, %v836_v17 }
 0x88b   :  { %v3544_v20 = vpop.eup %3543 }
 0x88c   :  { %v741_v23 = vmul.f32 %v3544_v20, %v3540_v9 }
 0x88f   :  { %v3546_v21 = vpop.eup %3545 }
 0x890   :  { %v740_v22 = vmul.f32 %v3546_v21, %v3542_v11 }
 0x892   :  { %3288 = vmatprep.mubr.msk.f32.mxu1 %vm311_vm7, %v740_v22 }
 0x893   :  { %3289 = vmatmul.mubr.msk.f32.vlgmr.msra.gmra.mxu1 %vm311_vm7, %v741_v23 }
 0x894   :  { %3292 = vmatpush3.xpose.msk.msra.mxu1 %vm223_vm1, %v836_v17  ;;  %3295 = vmatprep.mubr.msk.f32.mxu1 %vm223_vm1, %v830_v24 }
 0x895   :  { %3293 = vmatprep.subr.msk.mxu1 %vm223_vm1, %v834_v25 }
 0x898   :  { %3294 = vmatpush3.xpose.msk.msra.mxu1 %vm223_vm1, %v834_v25 }
 0x89b   :  { %3296 = vmatmul.mubr.msk.f32.vlgmr.msra.gmra.mxu1 %vm223_vm1, %v832_v26 }
 0x953   :  { %v3290_v27 = vpop.f32.mrf.mxu1 }
 0x955   :  { %v820_v28 = vpop.f32.mrf.mxu1 }
 0x95b   :  { %v3297_v29 = vpop.f32.mrf.mxu1 }
 0x95c   :  { %v921_v30 = vmul.f32 0.35355338, %v3297_v29 }
 0x95d   :  { %v911_v31 = vpop.f32.mrf.mxu1 }
 0x95e   :  { %v920_v32 = vmul.f32 0.35355338, %v911_v31  ;;  %v923_v33 = vsel %vm3831_vm6, %v921_v30, -inf  ;;  %v1205_v31 = vld [vmem:[%s4401_s9 + $0x18] sm:$0xff] }
 0x95f   :  { %v927_v34 = vsel %vm311_vm7, %v923_v33, -inf  ;;  %3316 = vmatprep.subr.mxu1 %v1205_v31 }
 0x960   :  { %928 = vmax.xlane.f32.xlu1 %v927_v34  ;;  %v922_v35 = vsel %vm3835_vm8, %v920_v32, -inf  ;;  %v1204_v32 = vld [vmem:[%s4401_s9 + $0x10] sm:$0xff]  ;;  %3317 = vmatpush3.msra.mxu1 %v1205_v31  ;;  %v1202_v34 = vld [vmem:[%s4401_s9] sm:$0xff] }
 0x961   :  { %v924_v37 = vsel %vm311_vm7, %v922_v35, -inf  ;;  %3318 = vmatprep.subr.mxu1 %v1204_v32  ;;  %v3016_v31 = vld [vmem:[%s4404_s12] ss:$0 sm:$0xff] }
 0x962   :  { %925 = vmax.xlane.f32.xlu0 %v924_v37  ;;  %3319 = vmatpush3.msra.mxu1 %v1204_v32 }
 0x971   :  { %946 = vrot.lane.b32.xlu1 %v3812_v38, %s4422_s22 }
 0x975   :  { %1035 = vrot.lane.b32.xlu1 %v3901_v56, %s4418_s2 }
 0x979   :  { %1037 = vrot.lane.b32.xlu1 %v3899_v55, %s4418_s2  ;;  %s4455_s2 = smov 8  }
 0x97d   :  { %1045 = vrot.lane.b32.xlu1 %v3290_v27, %s4420_s21 }
 0x9e9   :  { %v929_v39 = vpop.xlane.xlu1 %928 }
 0x9ea   :  { %v931_v40 = vsub.f32 %v923_v33, %v929_v39  ;;  %v1203_v33 = vld [vmem:[%s4401_s9 + $0x8] sm:$0xff] }
 0x9eb   :  { %v926_v41 = vpop.xlane.xlu0 %925  ;;  %3320 = vmatprep.subr.mxu1 %v1203_v33 }
 0x9ec   :  { %v934_v42 = vmul.f32 1.442695, %v931_v40  ;;  %v930_v43 = vsub.f32 %v922_v35, %v926_v41  ;;  %3321 = vmatpush3.msra.mxu1 %v1203_v33 }
 0x9ed   :  { %v947_v54 = vpop.permute.xlu1 %946  ;;  %3322 = vmatprep.subr.mxu1 %v1202_v34 }
 0x9ee   :  { %3547 = vpow2.f32 %v934_v42  ;;  %v932_v45 = vmul.f32 1.442695, %v930_v43  ;;  %3323 = vmatpush3.msra.mxu1 %v1202_v34 }
 0x9f0   :  { %3549 = vpow2.f32 %v932_v45  ;;  %v3011_v45 = vld [vmem:[%s4399_s7] ss:$0 sm:$0xff] }
 0x9f1   :  { %v1036_v2 = vpop.permute.xlu1 %1035 }
 0x9f2   :  { %v1057_v6 = vsel %vm223_vm1, %v3869_v19, %v1036_v2  ;;  %v3008_v19 = vld [vmem:[%s4398_s6] ss:$0 sm:$0xff]  ;;  %v1317_v2 = vld [vmem:[%s4403_s11 + $0x28] sm:$0xff] }
 0x9f5   :  { %v1038_v3 = vpop.permute.xlu1 %1037 }
 0x9f6   :  { %v1058_v8 = vsel %vm223_vm1, %v3867_v18, %v1038_v3  ;;  %v1316_v3 = vld [vmem:[%s4403_s11 + $0x20] sm:$0xff] }
 0x9f9   :  { %v1046_v4 = vpop.permute.xlu1 %1045 }
 0x9fa   :  { %v1060_v11 = vsel %vm311_vm7, %v1058_v8, %v1046_v4  ;;  %v1315_v4 = vld [vmem:[%s4403_s11 + $0x18] sm:$0xff]  ;;  %v3013_v8 = vld [vmem:[%s4402_s10] ss:$0 sm:$0xff] }
 0x9fb   :  { %v3548_v46 = vpop.eup %3547 }
 0x9fc   :  { %v939_v38 = vsel %vm311_vm7, %v3548_v46, 0.0 }
 0x9fd   :  { %v3550_v47 = vpop.eup %3549  ;;  %940 = vadd.xlane.f32.xlu0 %v939_v38  ;;  %v3012_v38 = vld [vmem:[%s4400_s8] ss:$0 sm:$0xff] }
 0x9fe   :  { %v936_v48 = vsel %vm311_vm7, %v3550_v47, 0.0 }
 0xa01   :  { %937 = vadd.xlane.f32.xlu0 %v936_v48 }
 0xa17   :  { %948 = vrot.lane.b32.xlu0 %v3810_v36, %s4422_s22  ;;  %v1067_v36 = vld [vmem:[%s4397_s5 + $0x18] sm:$0xff] }
 0xa1b   :  { %1043 = vrot.lane.b32.xlu0 %v820_v28, %s4420_s21  ;;  %s4434_s21 = smov 24  }
 0xa86   :  { %v941_v50 = vpop.xlane.xlu0 %940 }
 0xa87   :  { %3551 = vrcp.f32 %v941_v50 }
 0xa8a   :  { %v938_v51 = vpop.xlane.xlu0 %937 }
 0xa8b   :  { %3553 = vrcp.f32 %v938_v51 }
 0xa8e   :  { %v949_v53 = vpop.permute.xlu0 %948 }
 0xa8f   :  { %3298 = vmatprep.subr.mxu0 %v949_v53 }
 0xa90   :  { %3299 = vmatpush3.msra.mxu0 %v949_v53 }
 0xa91   :  { %3300 = vmatprep.subr.mxu0 %v947_v54 }
 0xa92   :  { %3301 = vmatpush3.msra.mxu0 %v947_v54  ;;  %v1044_v5 = vpop.permute.xlu0 %1043 }
 0xa93   :  { %3305 = vmatprep.subr.mxu0 %v1067_v36  ;;  %v1059_v9 = vsel %vm311_vm7, %v1057_v6, %v1044_v5  ;;  %v1314_v5 = vld [vmem:[%s4403_s11 + $0x10] sm:$0xff]  ;;  %v1313_v6 = vld [vmem:[%s4403_s11 + $0x8] sm:$0xff] }
 0xa94   :  { %v3552_v55 = vpop.eup %3551 }
 0xa95   :  { %v945_v58 = vmul.f32 %v3552_v55, %v3548_v46  ;;  %v1327_v55 = vld [vmem:[%s4403_s11 + $0x78] sm:$0xff] }
 0xa98   :  { %v3554_v56 = vpop.eup %3553 }
 0xa99   :  { %v944_v57 = vmul.f32 %v3554_v56, %v3550_v47  ;;  %v1326_v56 = vld [vmem:[%s4403_s11 + $0x70] sm:$0xff] }
 0xa9b   :  { %3302 = vmatprep.mubr.msk.f32.mxu0 %vm311_vm7, %v944_v57  ;;  %v1325_v57 = vld [vmem:[%s4403_s11 + $0x68] sm:$0xff] }
 0xa9c   :  { %3303 = vmatmul.mubr.msk.f32.vlgmr.msra.gmra.mxu0 %vm311_vm7, %v945_v58  ;;  %v1324_v58 = vld [vmem:[%s4403_s11 + $0x60] sm:$0xff] }
 0xa9d   :  { %3306 = vmatpush3.msra.mxu0 %v1067_v36  ;;  %v1323_v36 = vld [vmem:[%s4403_s11 + $0x58] sm:$0xff] }
 0xa9e   :  { %3307 = vmatprep.subr.mxu0 %v1066_v59 }
 0xa9f   :  { %3308 = vmatpush3.msra.mxu0 %v1066_v59  ;;  %v1322_v59 = vld [vmem:[%s4403_s11 + $0x50] sm:$0xff] }
 0xaa0   :  { %3309 = vmatprep.subr.mxu0 %v1065_v60 }
 0xaa1   :  { %3310 = vmatpush3.msra.mxu0 %v1065_v60  ;;  %v1321_v60 = vld [vmem:[%s4403_s11 + $0x48] sm:$0xff] }
 0xaa2   :  { %3311 = vmatprep.subr.mxu0 %v1064_v61 }
 0xaa3   :  { %3312 = vmatpush3.msra.mxu0 %v1064_v61  ;;  %v1320_v61 = vld [vmem:[%s4403_s11 + $0x40] sm:$0xff] }
 0xaa4   :  { %3327 = vmatprep.subr.mxu0 %v1327_v55 }
 0xb5c   :  { %v3304_v62 = vpop.f32.mrf.mxu0 }
 0xb5d   :  { %1053 = vrot.lane.b32.xlu1 %v3304_v62, %s4434_s21  ;;  %v1319_v62 = vld [vmem:[%s4403_s11 + $0x38] sm:$0xff] }
 0xb5e   :  { %v1024_v63 = vpop.f32.mrf.mxu0 }
 0xb5f   :  { %1051 = vrot.lane.b32.xlu0 %v1024_v63, %s4434_s21  ;;  %v1318_v63 = vld [vmem:[%s4403_s11 + $0x30] sm:$0xff] }
 0xbcf   :  { %v1054_v7 = vpop.permute.xlu1 %1053 }
 0xbd0   :  { %v1063_v13 = vsel %vm1061_vm9, %v1060_v11, %v1054_v7  ;;  %v1312_v7 = vld [vmem:[%s4403_s11] sm:$0xff] }
 0xbd1   :  { %v1052_v10 = vpop.permute.xlu0 %1051 }
 0xbd2   :  { %v1062_v12 = vsel %vm1061_vm9, %v1059_v9, %v1052_v10 }
 0xbd3   :  { %3313 = vmatprep.mubr.msk.f32.mxu0 %vm81_vm0, %v1062_v12 }
 0xbd4   :  { %3314 = vmatmul.mubr.msk.f32.vlgmr.msra.gmra.mxu0 %vm81_vm0, %v1063_v13 }
 0xbd5   :  { %3328 = vmatpush3.msra.mxu0 %v1327_v55  ;;  %v3021_v55 = vld [vmem:[%s4441_s23 + $0x20] sm:$0xff] }
 0xbd6   :  { %3329 = vmatprep.subr.mxu0 %v1326_v56 }
 0xbd7   :  { %3330 = vmatpush3.msra.mxu0 %v1326_v56 }
 0xbd8   :  { %3331 = vmatprep.subr.mxu0 %v1325_v57 }
 0xbd9   :  { %3332 = vmatpush3.msra.mxu0 %v1325_v57 }
 0xbda   :  { %3333 = vmatprep.subr.mxu0 %v1324_v58 }
 0xbdb   :  { %3334 = vmatpush3.msra.mxu0 %v1324_v58 }
 0xbdc   :  { %3335 = vmatprep.subr.mxu0 %v1323_v36 }
 0xbdd   :  { %3336 = vmatpush3.msra.mxu0 %v1323_v36 }
 0xbde   :  { %3337 = vmatprep.subr.mxu0 %v1322_v59 }
 0xbdf   :  { %3338 = vmatpush3.msra.mxu0 %v1322_v59 }
 0xbe0   :  { %3339 = vmatprep.subr.mxu0 %v1321_v60 }
 0xbe1   :  { %3340 = vmatpush3.msra.mxu0 %v1321_v60 }
 0xbe2   :  { %3341 = vmatprep.subr.mxu0 %v1320_v61 }
 0xbe3   :  { %3342 = vmatpush3.msra.mxu0 %v1320_v61 }
 0xbe4   :  { %3343 = vmatprep.subr.mxu0 %v1319_v62 }
 0xbe5   :  { %3344 = vmatpush3.msra.mxu0 %v1319_v62  ;;  %v3019_v62 = vld [vmem:[%s4442_s30 + $0x1] ss:$0 sm:$0xff]  ;;  %s4449_s30 = smov 112  }
 0xbe6   :  { %3345 = vmatprep.subr.mxu0 %v1318_v63 }
 0xbe7   :  { %3346 = vmatpush3.msra.mxu0 %v1318_v63 }
 0xbe8   :  { %3347 = vmatprep.subr.mxu0 %v1317_v2 }
 0xbe9   :  { %3348 = vmatpush3.msra.mxu0 %v1317_v2 }
 0xbea   :  { %3349 = vmatprep.subr.mxu0 %v1316_v3 }
 0xbeb   :  { %3350 = vmatpush3.msra.mxu0 %v1316_v3 }
 0xbec   :  { %3351 = vmatprep.subr.mxu0 %v1315_v4 }
 0xbed   :  { %3352 = vmatpush3.msra.mxu0 %v1315_v4 }
 0xbee   :  { %3353 = vmatprep.subr.mxu0 %v1314_v5 }
 0xbef   :  { %3354 = vmatpush3.msra.mxu0 %v1314_v5  ;;  %v3020_v5 = vld [vmem:[%s4443_s1 + $0x1] ss:$0 sm:$0xff]  ;;  %s4450_s1 = smov 56  }
 0xbf0   :  { %3355 = vmatprep.subr.mxu0 %v1313_v6 }
 0xbf1   :  { %3356 = vmatpush3.msra.mxu0 %v1313_v6 }
 0xbf2   :  { %3357 = vmatprep.subr.mxu0 %v1312_v7 }
 0xbf3   :  { %3358 = vmatpush3.msra.mxu0 %v1312_v7 }
 0xc94   :  { %v3315_v14 = vpop.f32.mrf.mxu0 }
 0xc95   :  { %v1153_v15 = vadd.f32 %v3315_v14, %v3008_v19 }
 0xc96   :  { %v1147_v18 = vpop.f32.mrf.mxu0 }
 0xc97   :  { %v3979_v16 = vadd.f32 %v1153_v15, %v3777_v1  ;;  %v1148_v17 = vadd.f32 %v3008_v19, %v1147_v18 }
 0xc99   :  { %v3982_v20 = vadd.f32 %v1148_v17, %v3772_v0  ;;  %v1163_v21 = vsel %vm81_vm0, %v3979_v16, 0.0 }
 0xc9a   :  { %1164 = vadd.xlane.f32.xlu1 %v1163_v21 }
 0xc9b   :  { %v1160_v22 = vsel %vm81_vm0, %v3982_v20, 0.0 }
 0xc9c   :  { %1161 = vadd.xlane.f32.xlu0 %v1160_v22 }
 0xd23   :  { %v1165_v23 = vpop.xlane.xlu1 %1164 }
 0xd24   :  { %v1167_v24 = vmul.f32 0.03125, %v1165_v23 }
 0xd25   :  { %v1162_v25 = vpop.xlane.xlu0 %1161 }
 0xd26   :  { %v1166_v26 = vmul.f32 0.03125, %v1162_v25  ;;  %v1169_v27 = vsub.f32 %v3979_v16, %v1167_v24 }
 0xd28   :  { %v1168_v1 = vsub.f32 %v3982_v20, %v1166_v26  ;;  %v1171_v29 = vmul.f32 %v1169_v27, %v1169_v27 }
 0xd2a   :  { %v1170_v28 = vmul.f32 %v1168_v1, %v1168_v1  ;;  %v1175_v30 = vsel %vm81_vm0, %v1171_v29, 0.0 }
 0xd2c   :  { %v1172_v0 = vsel %vm81_vm0, %v1170_v28, 0.0 }
 0xd2d   :  { %1173 = vadd.xlane.f32.xlu0 %v1172_v0 }
 0xd31   :  { %1176 = vadd.xlane.f32.xlu0 %v1175_v30 }
 0xdb6   :  { %v1174_v35 = vpop.xlane.xlu0 %1173 }
 0xdb7   :  { %v1178_v37 = vmul.f32 0.03125, %v1174_v35 }
 0xdb9   :  { %v1180_v39 = vadd.f32 1e-05, %v1178_v37 }
 0xdba   :  { %v1177_v40 = vpop.xlane.xlu0 %1176 }
 0xdbb   :  { %3555 = vrsqrt.f32 %v1180_v39  ;;  %v1179_v41 = vmul.f32 0.03125, %v1177_v40 }
 0xdbd   :  { %v1181_v42 = vadd.f32 1e-05, %v1179_v41 }
 0xdbf   :  { %3557 = vrsqrt.f32 %v1181_v42 }
 0xdc8   :  { %v3556_v43 = vpop.eup %3555 }
 0xdc9   :  { %v1184_v46 = vmul.f32 %v3556_v43, %v1168_v1 }
 0xdcb   :  { %v1192_v47 = vmul.f32 %v3011_v45, %v1184_v46 }
 0xdcc   :  { %v3558_v48 = vpop.eup %3557 }
 0xdcd   :  { %v1185_v50 = vmul.f32 %v3558_v48, %v1169_v27  ;;  %v1200_v51 = vadd.f32 %v3012_v38, %v1192_v47 }
 0xdcf   :  { %v1193_v53 = vmul.f32 %v3011_v45, %v1185_v50  ;;  %3324 = vmatprep.mubr.msk.f32.mxu1 %vm81_vm0, %v1200_v51  ;;  %v3024_v51 = vld [vmem:[%s4441_s23 + $0x38] sm:$0xff] }
 0xdd0   :  { %3362 = vmatprep.subr.mxu1 %v3024_v51 }
 0xdd1   :  { %v1201_v54 = vadd.f32 %v3012_v38, %v1193_v53  ;;  %v3023_v53 = vld [vmem:[%s4441_s23 + $0x30] sm:$0xff] }
 0xdd3   :  { %3325 = vmatmul.mubr.msk.f32.vlgmr.msra.gmra.mxu1 %vm81_vm0, %v1201_v54  ;;  %v3022_v54 = vld [vmem:[%s4441_s23 + $0x28] sm:$0xff] }
 0xdd4   :  { %3363 = vmatpush3.msra.mxu1 %v3024_v51 }
 0xdd5   :  { %3364 = vmatprep.subr.mxu1 %v3023_v53 }
 0xdd6   :  { %3365 = vmatpush3.msra.mxu1 %v3023_v53 }
 0xdd7   :  { %3366 = vmatprep.subr.mxu1 %v3022_v54 }
 0xdd8   :  { %3367 = vmatpush3.msra.mxu1 %v3022_v54 }
 0xdd9   :  { %3368 = vmatprep.subr.mxu1 %v3021_v55 }
 0xdda   :  { %3369 = vmatpush3.msra.mxu1 %v3021_v55 }
 0xe93   :  { %v3326_v9 = vpop.f32.mrf.mxu1 }
 0xe94   :  { %v1291_v10 = vadd.f32 %v3326_v9, %v3013_v8  ;;  %v3026_v9 = vld [vmem:[%s4396_s4 + $0x1] ss:$0 sm:$0xff]  ;;  %s4448_s4 = smov 80  }
 0xe95   :  { %v1285_v11 = vpop.f32.mrf.mxu1 }
 0xe96   :  { %v1297_v12 = vmul.f32 0.044715, %v1291_v10  ;;  %v1286_v13 = vadd.f32 %v3013_v8, %v1285_v11  ;;  %v1295_v0 = vmul.f32 0.5, %v1291_v10 }
 0xe98   :  { %v1299_v19 = vmul.f32 %v1297_v12, %v1291_v10  ;;  %v1296_v14 = vmul.f32 0.044715, %v1286_v13  ;;  %v1294_v1 = vmul.f32 0.5, %v1286_v13 }
 0xe9a   :  { %v1301_v15 = vmul.f32 %v1299_v19, %v1291_v10  ;;  %v1298_v18 = vmul.f32 %v1296_v14, %v1286_v13 }
 0xe9c   :  { %v1303_v17 = vadd.f32 %v1301_v15, %v1291_v10  ;;  %v1300_v21 = vmul.f32 %v1298_v18, %v1286_v13 }
 0xe9e   :  { %v1302_v22 = vadd.f32 %v1300_v21, %v1286_v13  ;;  %v1305_v23 = vmul.f32 0.7978846, %v1303_v17 }
 0xea0   :  { %v1304_v24 = vmul.f32 0.7978846, %v1302_v22  ;;  %3559 = vtanh.f32 %v1305_v23 }
 0xea2   :  { %3561 = vtanh.f32 %v1304_v24 }
 0xead   :  { %v3560_v25 = vpop.eup %3559 }
 0xeae   :  { %v1309_v27 = vadd.f32 1.0, %v3560_v25 }
 0xeaf   :  { %v3562_v26 = vpop.eup %3561 }
 0xeb0   :  { %v1308_v28 = vadd.f32 1.0, %v3562_v26  ;;  %v1311_v30 = vmul.f32 %v1309_v27, %v1295_v0 }
 0xeb2   :  { %v1310_v29 = vmul.f32 %v1308_v28, %v1294_v1 }
 0xeb4   :  { %3359 = vmatprep.mubr.f32.mxu0 %v1310_v29 }
 0xeb5   :  { %3360 = vmatmul.mubr.f32.vlgmr.msra.gmra.mxu0 %v1311_v30 }
 0xf75   :  { %v3361_v32 = vpop.f32.mrf.mxu0 }
 0xf76   :  { %v1407_v33 = vadd.f32 %v3361_v32, %v3016_v31 }
 0xf77   :  { %v1401_v34 = vpop.f32.mrf.mxu0 }
 0xf78   :  { %v4067_v35 = vadd.f32 %v1407_v33, %v3979_v16  ;;  %v1402_v37 = vadd.f32 %v3016_v31, %v1401_v34 }
 0xf7a   :  { %v4070_v39 = vadd.f32 %v1402_v37, %v3982_v20  ;;  %v1419_v40 = vsel %vm81_vm0, %v4067_v35, 0.0 }
 0xf7b   :  { %1420 = vadd.xlane.f32.xlu1 %v1419_v40 }
 0xf7c   :  { %v1416_v41 = vsel %vm81_vm0, %v4070_v39, 0.0 }
 0xf7d   :  { %1417 = vadd.xlane.f32.xlu0 %v1416_v41 }
0x1004   :  { %v1421_v42 = vpop.xlane.xlu1 %1420 }
0x1005   :  { %v1423_v43 = vmul.f32 0.03125, %v1421_v42 }
0x1006   :  { %v1418_v45 = vpop.xlane.xlu0 %1417 }
0x1007   :  { %v1425_v46 = vsub.f32 %v4067_v35, %v1423_v43  ;;  %v1422_v38 = vmul.f32 0.03125, %v1418_v45 }
0x1009   :  { %v1424_v16 = vsub.f32 %v4070_v39, %v1422_v38  ;;  %v1427_v47 = vmul.f32 %v1425_v46, %v1425_v46 }
0x100b   :  { %v1431_v20 = vsel %vm81_vm0, %v1427_v47, 0.0  ;;  %v1426_v48 = vmul.f32 %v1424_v16, %v1424_v16 }
0x100c   :  { %1432 = vadd.xlane.f32.xlu1 %v1431_v20 }
0x100d   :  { %v1428_v50 = vsel %vm81_vm0, %v1426_v48, 0.0 }
0x100e   :  { %1429 = vadd.xlane.f32.xlu0 %v1428_v50 }
0x1095   :  { %v1433_v56 = vpop.xlane.xlu1 %1432 }
0x1096   :  { %v1435_v57 = vmul.f32 0.03125, %v1433_v56 }
0x1097   :  { %v1430_v58 = vpop.xlane.xlu0 %1429 }
0x1098   :  { %v1437_v36 = vadd.f32 1e-05, %v1435_v57  ;;  %v1434_v59 = vmul.f32 0.03125, %v1430_v58 }
0x109a   :  { %3563 = vrsqrt.f32 %v1437_v36  ;;  %v1436_v60 = vadd.f32 1e-05, %v1434_v59 }
0x109c   :  { %3565 = vrsqrt.f32 %v1436_v60 }
0x10a7   :  { %v3564_v61 = vpop.eup %3563 }
0x10a8   :  { %v1441_v63 = vmul.f32 %v3564_v61, %v1425_v46 }
0x10a9   :  { %v3566_v2 = vpop.eup %3565 }
0x10aa   :  { %v1440_v3 = vmul.f32 %v3566_v2, %v1424_v16  ;;  %v1449_v4 = vmul.f32 %v3019_v62, %v1441_v63 }
0x10ac   :  { %v1448_v6 = vmul.f32 %v3019_v62, %v1440_v3  ;;  %v1457_v8 = vadd.f32 %v3020_v5, %v1449_v4 }
0x10ae   :  { %v1456_v7 = vadd.f32 %v3020_v5, %v1448_v6 }
0x10b0   :  { %3370 = vmatprep.mubr.msk.f32.mxu1 %vm81_vm0, %v1456_v7 }
0x10b1   :  { %3371 = vmatmul.mubr.msk.f32.vlgmr.msra.gmra.mxu1 %vm81_vm0, %v1457_v8 }
0x1171   :  { %v3372_v10 = vpop.f32.mrf.mxu1 }
0x1172   :  { %v4103_v11 = vadd.f32 %v3372_v10, %v3026_v9 }
0x1173   :  { %v1543_v12 = vpop.f32.mrf.mxu1 }
0x1174   :  { %v4105_v13 = vadd.f32 %v3026_v9, %v1543_v12  ;;  %1556 = vrot.lane.b32.xlu0 %v4103_v11, %s3651_s24 }
0x1176   :  { %1554 = vrot.lane.b32.xlu1 %v4105_v13, %s3651_s24  ;;  %3377 = vmatprep.mubr.msk.f32.mxu1 %vm223_vm1, %v4105_v13  ;;  %s4451_s24 = smov 48  }
0x11e6   :  { %v1557_v19 = vpop.permute.xlu0 %1556 }
0x11e7   :  { %3373 = vmatprep.subr.msk.mxu1 %vm223_vm1, %v1557_v19 }
0x11e8   :  { %3374 = vmatpush3.xpose.msk.msra.mxu1 %vm223_vm1, %v1557_v19  ;;  %v1555_v14 = vpop.permute.xlu1 %1554 }
0x11e9   :  { %3375 = vmatprep.subr.msk.mxu1 %vm223_vm1, %v1555_v14 }
0x11ec   :  { %3376 = vmatpush3.xpose.msk.msra.mxu1 %vm223_vm1, %v1555_v14 }
0x11ef   :  { %3378 = vmatmul.mubr.msk.f32.vlgmr.msra.gmra.mxu1 %vm223_vm1, %v4103_v11 }
0x12af   :  { %v3379_v15 = vpop.f32.mrf.mxu1 }
0x12b0   :  { %v1642_v18 = vmul.f32 0.35355338, %v3379_v15 }
0x12b1   :  { %v1632_v17 = vpop.f32.mrf.mxu1 }
0x12b2   :  { %v1641_v21 = vmul.f32 0.35355338, %v1632_v17  ;;  %v1644_v22 = vsel %vm3831_vm6, %v1642_v18, -inf }
0x12b3   :  { %v1648_v23 = vsel %vm311_vm7, %v1644_v22, -inf }
0x12b4   :  { %1649 = vmax.xlane.f32.xlu0 %v1648_v23  ;;  %v1643_v24 = vsel %vm3835_vm8, %v1641_v21, -inf }
0x12b5   :  { %v1645_v25 = vsel %vm311_vm7, %v1643_v24, -inf }
0x12b6   :  { %1646 = vmax.xlane.f32.xlu1 %v1645_v25 }
0x12c7   :  { %1667 = vrot.lane.b32.xlu1 %v4105_v13, %s3652_s25 }
0x12ca   :  { %1669 = vrot.lane.b32.xlu0 %v4103_v11, %s3652_s25  ;;  %s4452_s25 = smov 72  }
0x12cb   :  { %1760 = vrot.lane.b32.xlu1 %v4103_v11, %s3653_s3 }
0x12cf   :  { %1758 = vrot.lane.b32.xlu1 %v4105_v13, %s3653_s3  ;;  %s4453_s3 = smov 104  }
0x133d   :  { %v1650_v26 = vpop.xlane.xlu0 %1649 }
0x133e   :  { %v1652_v27 = vsub.f32 %v1644_v22, %v1650_v26 }
0x133f   :  { %v1647_v1 = vpop.xlane.xlu1 %1646 }
0x1340   :  { %v1655_v28 = vmul.f32 1.442695, %v1652_v27  ;;  %v1651_v0 = vsub.f32 %v1643_v24, %v1647_v1 }
0x1341   :  { %v1670_v29 = vpop.permute.xlu0 %1669 }
0x1342   :  { %3567 = vpow2.f32 %v1655_v28  ;;  %v1653_v30 = vmul.f32 1.442695, %v1651_v0  ;;  %3380 = vmatprep.subr.mxu1 %v1670_v29 }
0x1343   :  { %3381 = vmatpush3.msra.mxu1 %v1670_v29  ;;  %v1668_v31 = vpop.permute.xlu1 %1667 }
0x1344   :  { %3569 = vpow2.f32 %v1653_v30  ;;  %3382 = vmatprep.subr.mxu1 %v1668_v31 }
0x1345   :  { %3383 = vmatpush3.msra.mxu1 %v1668_v31 }
0x1347   :  { %v1761_v32 = vpop.permute.xlu1 %1760 }
0x1348   :  { %3387 = vmatprep.subr.msk.mxu1 %vm223_vm1, %v1761_v32 }
0x134b   :  { %v1759_v41 = vpop.permute.xlu1 %1758 }
0x134f   :  { %v3568_v33 = vpop.eup %3567 }
0x1350   :  { %v1660_v34 = vsel %vm311_vm7, %v3568_v33, 0.0 }
0x1351   :  { %v3570_v37 = vpop.eup %3569  ;;  %1661 = vadd.xlane.f32.xlu1 %v1660_v34 }
0x1352   :  { %v1657_v40 = vsel %vm311_vm7, %v3570_v37, 0.0 }
0x1353   :  { %1658 = vadd.xlane.f32.xlu0 %v1657_v40 }
0x1362   :  { %1754 = vrot.lane.b32.xlu1 %v4105_v13, %s3654_s26 }
0x1366   :  { %1962 = vrot.lane.b32.xlu1 %v4105_v13, %s4448_s4 }
0x1369   :  { %1964 = vrot.lane.b32.xlu0 %v4103_v11, %s4448_s4 }
0x136a   :  { %1960 = vrot.lane.b32.xlu1 %v4103_v11, %s4449_s30 }
0x136d   :  { %1756 = vrot.lane.b32.xlu0 %v4103_v11, %s3654_s26  ;;  %s4454_s26 = smov 40  }
0x1371   :  { %1958 = vrot.lane.b32.xlu0 %v4105_v13, %s4449_s30  ;;  %s4457_s30 = smov 24  }
0x13da   :  { %v1662_v42 = vpop.xlane.xlu1 %1661 }
0x13db   :  { %3571 = vrcp.f32 %v1662_v42 }
0x13dc   :  { %v1659_v43 = vpop.xlane.xlu0 %1658 }
0x13dd   :  { %3573 = vrcp.f32 %v1659_v43 }
0x13de   :  { %v1755_v45 = vpop.permute.xlu1 %1754 }
0x13e0   :  { %v1965_v46 = vpop.permute.xlu0 %1964 }
0x13e1   :  { %3401 = vmatprep.subr.msk.mxu0 %vm223_vm1, %v1965_v46 }
0x13e2   :  { %3402 = vmatpush3.xpose.msk.msra.mxu0 %vm223_vm1, %v1965_v46  ;;  %v1963_v38 = vpop.permute.xlu1 %1962 }
0x13e3   :  { %3403 = vmatprep.subr.msk.mxu0 %vm223_vm1, %v1963_v38 }
0x13e4   :  { %v1757_v16 = vpop.permute.xlu0 %1756 }
0x13e6   :  { %3404 = vmatpush3.xpose.msk.msra.mxu0 %vm223_vm1, %v1963_v38  ;;  %v1961_v48 = vpop.permute.xlu1 %1960 }
0x13e8   :  { %v1959_v47 = vpop.permute.xlu0 %1958  ;;  %v3572_v20 = vpop.eup %3571 }
0x13e9   :  { %3405 = vmatprep.mubr.msk.f32.mxu0 %vm223_vm1, %v1959_v47  ;;  %v1666_v53 = vmul.f32 %v3572_v20, %v3568_v33 }
0x13ea   :  { %v3574_v50 = vpop.eup %3573  ;;  %3406 = vmatmul.mubr.msk.f32.vlgmr.msra.gmra.mxu0 %vm223_vm1, %v1961_v48 }
0x13eb   :  { %v1665_v51 = vmul.f32 %v3574_v50, %v3570_v37 }
0x13ed   :  { %3384 = vmatprep.mubr.msk.f32.mxu1 %vm311_vm7, %v1665_v51 }
0x13ee   :  { %3385 = vmatmul.mubr.msk.f32.vlgmr.msra.gmra.mxu1 %vm311_vm7, %v1666_v53 }
0x13ef   :  { %3388 = vmatpush3.xpose.msk.msra.mxu1 %vm223_vm1, %v1761_v32  ;;  %3391 = vmatprep.mubr.msk.f32.mxu1 %vm223_vm1, %v1755_v45 }
0x13f0   :  { %3389 = vmatprep.subr.msk.mxu1 %vm223_vm1, %v1759_v41 }
0x13f3   :  { %3390 = vmatpush3.xpose.msk.msra.mxu1 %vm223_vm1, %v1759_v41 }
0x13f6   :  { %3392 = vmatmul.mubr.msk.f32.vlgmr.msra.gmra.mxu1 %vm223_vm1, %v1757_v16 }
0x14aa   :  { %v3407_v55 = vpop.f32.mrf.mxu0 }
0x14ab   :  { %v2050_v4 = vmul.f32 0.35355338, %v3407_v55 }
0x14ac   :  { %v2040_v57 = vpop.f32.mrf.mxu0 }
0x14ad   :  { %v2049_v60 = vmul.f32 0.35355338, %v2040_v57  ;;  %v2052_v7 = vsel %vm3831_vm6, %v2050_v4, -inf }
0x14ae   :  { %v4161_v54 = vpop.f32.mrf.mxu1  ;;  %v2056_v8 = vsel %vm311_vm7, %v2052_v7, -inf }
0x14af   :  { %v2051_v5 = vsel %vm3835_vm8, %v2049_v60, -inf }
0x14b0   :  { %v4163_v56 = vpop.f32.mrf.mxu1  ;;  %v2053_v6 = vsel %vm311_vm7, %v2051_v5, -inf }
0x14b6   :  { %v3393_v58 = vpop.f32.mrf.mxu1 }
0x14b7   :  { %v1846_v36 = vmul.f32 0.35355338, %v3393_v58 }
0x14b8   :  { %v1836_v59 = vpop.f32.mrf.mxu1 }
0x14b9   :  { %v1845_v61 = vmul.f32 0.35355338, %v1836_v59  ;;  %v1848_v62 = vsel %vm3831_vm6, %v1846_v36, -inf }
0x14ba   :  { %v1852_v63 = vsel %vm311_vm7, %v1848_v62, -inf }
0x14bb   :  { %1853 = vmax.xlane.f32.xlu1 %v1852_v63  ;;  %v1847_v2 = vsel %vm3835_vm8, %v1845_v61, -inf }
0x14bc   :  { %v1849_v3 = vsel %vm311_vm7, %v1847_v2, -inf }
0x14bd   :  { %1850 = vmax.xlane.f32.xlu0 %v1849_v3 }
0x14c1   :  { %2054 = vmax.xlane.f32.xlu0 %v2053_v6 }
0x14c5   :  { %2057 = vmax.xlane.f32.xlu0 %v2056_v8 }
0x1544   :  { %v1854_v12 = vpop.xlane.xlu1 %1853 }
0x1545   :  { %v1856_v15 = vsub.f32 %v1848_v62, %v1854_v12 }
0x1546   :  { %v1851_v9 = vpop.xlane.xlu0 %1850 }
0x1547   :  { %v1855_v10 = vsub.f32 %v1847_v2, %v1851_v9  ;;  %v1859_v23 = vmul.f32 1.442695, %v1856_v15 }
0x1549   :  { %v1857_v18 = vmul.f32 1.442695, %v1855_v10 }
0x154a   :  { %v2055_v19 = vpop.xlane.xlu0 %2054 }
0x154b   :  { %v2059_v14 = vsub.f32 %v2051_v5, %v2055_v19 }
0x154d   :  { %v2061_v17 = vmul.f32 1.442695, %v2059_v14 }
0x154e   :  { %v2058_v21 = vpop.xlane.xlu0 %2057 }
0x154f   :  { %3575 = vpow2.f32 %v2061_v17  ;;  %v2060_v22 = vsub.f32 %v2052_v7, %v2058_v21 }
0x1550   :  { %3577 = vpow2.f32 %v1857_v18 }
0x1551   :  { %v2063_v24 = vmul.f32 1.442695, %v2060_v22 }
0x1553   :  { %3579 = vpow2.f32 %v2063_v24 }
0x1554   :  { %3581 = vpow2.f32 %v1859_v23 }
0x155c   :  { %v3576_v25 = vpop.eup %3575 }
0x155d   :  { %v2065_v26 = vsel %vm311_vm7, %v3576_v25, 0.0  ;;  %v3578_v27 = vpop.eup %3577 }
0x155e   :  { %2066 = vadd.xlane.f32.xlu0 %v2065_v26  ;;  %v1861_v28 = vsel %vm311_vm7, %v3578_v27, 0.0  ;;  %v3054_v26 = vld [vmem:[%s4397_s5 + $0x28] sm:$0xff] }
0x1560   :  { %v3580_v1 = vpop.eup %3579 }
0x1561   :  { %v2068_v0 = vsel %vm311_vm7, %v3580_v1, 0.0  ;;  %v3582_v29 = vpop.eup %3581 }
0x1562   :  { %1862 = vadd.xlane.f32.xlu0 %v1861_v28  ;;  %2069 = vadd.xlane.f32.xlu1 %v2068_v0  ;;  %v1864_v30 = vsel %vm311_vm7, %v3582_v29, 0.0 }
0x1566   :  { %1865 = vadd.xlane.f32.xlu1 %v1864_v30 }
0x1577   :  { %1871 = vrot.lane.b32.xlu1 %v4105_v13, %s4450_s1 }
0x1578   :  { %1873 = vrot.lane.b32.xlu0 %v4103_v11, %s4450_s1 }
0x157b   :  { %2077 = vrot.lane.b32.xlu1 %v4103_v11, %s4451_s24 }
0x157c   :  { %2168 = vrot.lane.b32.xlu0 %v4103_v11, %s4452_s25 }
0x157f   :  { %2075 = vrot.lane.b32.xlu1 %v4105_v13, %s4451_s24 }
0x1580   :  { %2162 = vrot.lane.b32.xlu0 %v4105_v13, %s4453_s3 }
0x1583   :  { %2166 = vrot.lane.b32.xlu1 %v4105_v13, %s4452_s25 }
0x1587   :  { %2164 = vrot.lane.b32.xlu1 %v4103_v11, %s4453_s3 }
0x15e7   :  { %v2067_v31 = vpop.xlane.xlu0 %2066 }
0x15eb   :  { %v1863_v32 = vpop.xlane.xlu0 %1862  ;;  %v2070_v33 = vpop.xlane.xlu1 %2069 }
0x15ec   :  { %3583 = vrcp.f32 %v1863_v32 }
0x15ed   :  { %3585 = vrcp.f32 %v2067_v31 }
0x15ef   :  { %v1874_v34 = vpop.permute.xlu0 %1873  ;;  %v1866_v37 = vpop.xlane.xlu1 %1865 }
0x15f0   :  { %3587 = vrcp.f32 %v1866_v37  ;;  %3394 = vmatprep.subr.mxu1 %v1874_v34 }
0x15f1   :  { %3395 = vmatpush3.msra.mxu1 %v1874_v34  ;;  %3589 = vrcp.f32 %v2070_v33 }
0x15f3   :  { %v1872_v40 = vpop.permute.xlu1 %1871  ;;  %v2169_v38 = vpop.permute.xlu0 %2168 }
0x15f4   :  { %3396 = vmatprep.subr.mxu1 %v1872_v40 }
0x15f5   :  { %3397 = vmatpush3.msra.mxu1 %v1872_v40 }
0x15f7   :  { %v2078_v41 = vpop.permute.xlu1 %2077  ;;  %v2163_v51 = vpop.permute.xlu0 %2162 }
0x15f8   :  { %3408 = vmatprep.subr.mxu1 %v2078_v41 }
0x15f9   :  { %v3584_v42 = vpop.eup %3583 }
0x15fa   :  { %v1869_v43 = vmul.f32 %v3584_v42, %v3578_v27  ;;  %v3586_v45 = vpop.eup %3585  ;;  %v3053_v27 = vld [vmem:[%s4397_s5 + $0x20] sm:$0xff] }
0x15fb   :  { %v2076_v20 = vpop.permute.xlu1 %2075  ;;  %v2073_v48 = vmul.f32 %v3586_v45, %v3576_v25  ;;  %v3055_v25 = vld [vmem:[%s4397_s5 + $0x30] sm:$0xff] }
0x15fc   :  { %3398 = vmatprep.mubr.msk.f32.mxu1 %vm311_vm7, %v1869_v43 }
0x15fd   :  { %v3588_v46 = vpop.eup %3587 }
0x15fe   :  { %v1870_v16 = vmul.f32 %v3588_v46, %v3582_v29  ;;  %v3590_v47 = vpop.eup %3589 }
0x15ff   :  { %v2074_v50 = vmul.f32 %v3590_v47, %v3580_v1  ;;  %v2167_v53 = vpop.permute.xlu1 %2166 }
0x1600   :  { %3399 = vmatmul.mubr.msk.f32.vlgmr.msra.gmra.mxu1 %vm311_vm7, %v1870_v16 }
0x1601   :  { %3409 = vmatpush3.msra.mxu1 %v2078_v41  ;;  %3412 = vmatprep.mubr.msk.f32.mxu1 %vm311_vm7, %v2073_v48 }
0x1602   :  { %3410 = vmatprep.subr.mxu1 %v2076_v20 }
0x1603   :  { %3411 = vmatpush3.msra.mxu1 %v2076_v20  ;;  %v2165_v55 = vpop.permute.xlu1 %2164 }
0x1604   :  { %3415 = vmatprep.subr.msk.mxu1 %vm223_vm1, %v2169_v38  ;;  %3413 = vmatmul.mubr.msk.f32.vlgmr.msra.gmra.mxu1 %vm311_vm7, %v2074_v50 }
0x1605   :  { %3416 = vmatpush3.xpose.msk.msra.mxu1 %vm223_vm1, %v2169_v38  ;;  %3419 = vmatprep.mubr.msk.f32.mxu1 %vm223_vm1, %v2163_v51 }
0x1606   :  { %3417 = vmatprep.subr.msk.mxu1 %vm223_vm1, %v2167_v53 }
0x1609   :  { %3418 = vmatpush3.xpose.msk.msra.mxu1 %vm223_vm1, %v2167_v53 }
0x160c   :  { %3420 = vmatmul.mubr.msk.f32.vlgmr.msra.gmra.mxu1 %vm223_vm1, %v2165_v55 }
0x16c0   :  { %v3400_v57 = vpop.f32.mrf.mxu1 }
0x16c2   :  { %v1949_v58 = vpop.f32.mrf.mxu1 }
0x16c4   :  { %v3414_v36 = vpop.f32.mrf.mxu1 }
0x16c6   :  { %v2153_v59 = vpop.f32.mrf.mxu1 }
0x16cc   :  { %v3421_v60 = vpop.f32.mrf.mxu1 }
0x16cd   :  { %v2254_v61 = vmul.f32 0.35355338, %v3421_v60  ;;  %v3068_v60 = vld [vmem:[%s4401_s9 + $0x38] sm:$0xff] }
0x16ce   :  { %v2244_v62 = vpop.f32.mrf.mxu1  ;;  %3440 = vmatprep.subr.mxu1 %v3068_v60 }
0x16cf   :  { %v2253_v63 = vmul.f32 0.35355338, %v2244_v62  ;;  %v2256_v2 = vsel %vm3831_vm6, %v2254_v61, -inf  ;;  %v3067_v61 = vld [vmem:[%s4401_s9 + $0x30] sm:$0xff]  ;;  %3441 = vmatpush3.msra.mxu1 %v3068_v60  ;;  %v3066_v62 = vld [vmem:[%s4401_s9 + $0x28] sm:$0xff] }
0x16d0   :  { %v2260_v3 = vsel %vm311_vm7, %v2256_v2, -inf  ;;  %3442 = vmatprep.subr.mxu1 %v3067_v61 }
0x16d1   :  { %2261 = vmax.xlane.f32.xlu1 %v2260_v3  ;;  %v2255_v4 = vsel %vm3835_vm8, %v2253_v63, -inf  ;;  %3443 = vmatpush3.msra.mxu1 %v3067_v61  ;;  %v3065_v63 = vld [vmem:[%s4401_s9 + $0x20] sm:$0xff] }
0x16d2   :  { %v2257_v5 = vsel %vm311_vm7, %v2255_v4, -inf  ;;  %3444 = vmatprep.subr.mxu1 %v3066_v62 }
0x16d3   :  { %2258 = vmax.xlane.f32.xlu0 %v2257_v5  ;;  %3445 = vmatpush3.msra.mxu1 %v3066_v62 }
0x16d4   :  { %3446 = vmatprep.subr.mxu1 %v3065_v63 }
0x16d5   :  { %3447 = vmatpush3.msra.mxu1 %v3065_v63 }
0x16e2   :  { %2279 = vrot.lane.b32.xlu1 %v4105_v13, %s4454_s26 }
0x16e6   :  { %2368 = vrot.lane.b32.xlu1 %v1949_v58, %s4455_s2 }
0x16ea   :  { %2370 = vrot.lane.b32.xlu1 %v3400_v57, %s4455_s2 }
0x16ee   :  { %2378 = vrot.lane.b32.xlu1 %v3414_v36, %s4456_s27 }
0x175a   :  { %v2262_v49 = vpop.xlane.xlu1 %2261 }
0x175b   :  { %v2264_v6 = vsub.f32 %v2256_v2, %v2262_v49 }
0x175c   :  { %v2259_v7 = vpop.xlane.xlu0 %2258 }
0x175d   :  { %v2267_v8 = vmul.f32 1.442695, %v2264_v6  ;;  %v2263_v9 = vsub.f32 %v2255_v4, %v2259_v7 }
0x175e   :  { %v2280_v17 = vpop.permute.xlu1 %2279 }
0x175f   :  { %3591 = vpow2.f32 %v2267_v8  ;;  %v2265_v52 = vmul.f32 1.442695, %v2263_v9  ;;  %v3063_v8 = vld [vmem:[%s4399_s7 + $0x1] ss:$0 sm:$0xff] }
0x1761   :  { %3593 = vpow2.f32 %v2265_v52  ;;  %v3064_v52 = vld [vmem:[%s4400_s8 + $0x1] ss:$0 sm:$0xff] }
0x1762   :  { %v2369_v0 = vpop.permute.xlu1 %2368 }
0x1763   :  { %v2390_v32 = vsel %vm223_vm1, %v4163_v56, %v2369_v0  ;;  %v3058_v56 = vld [vmem:[%s4398_s6 + $0x1] ss:$0 sm:$0xff]  ;;  %v3076_v0 = vld [vmem:[%s4403_s11 + $0x98] sm:$0xff] }
0x1766   :  { %v2371_v29 = vpop.permute.xlu1 %2370 }
0x1767   :  { %v2391_v34 = vsel %vm223_vm1, %v4161_v54, %v2371_v29  ;;  %v3075_v29 = vld [vmem:[%s4403_s11 + $0x90] sm:$0xff] }
0x176a   :  { %v2379_v30 = vpop.permute.xlu1 %2378 }
0x176b   :  { %v2393_v41 = vsel %vm311_vm7, %v2391_v34, %v2379_v30  ;;  %v3074_v30 = vld [vmem:[%s4403_s11 + $0x88] sm:$0xff] }
0x176c   :  { %v3592_v10 = vpop.eup %3591 }
0x176d   :  { %v2272_v12 = vsel %vm311_vm7, %v3592_v10, 0.0 }
0x176e   :  { %v3594_v19 = vpop.eup %3593  ;;  %2273 = vadd.xlane.f32.xlu0 %v2272_v12 }
0x176f   :  { %v2269_v13 = vsel %vm311_vm7, %v3594_v19, 0.0 }
0x1772   :  { %2270 = vadd.xlane.f32.xlu0 %v2269_v13 }
0x1788   :  { %2281 = vrot.lane.b32.xlu0 %v4103_v11, %s4454_s26  ;;  %v3056_v11 = vld [vmem:[%s4397_s5 + $0x38] sm:$0xff] }
0x178c   :  { %2376 = vrot.lane.b32.xlu0 %v2153_v59, %s4456_s27 }
0x17f7   :  { %v2274_v14 = vpop.xlane.xlu0 %2273 }
0x17f8   :  { %3595 = vrcp.f32 %v2274_v14 }
0x17fb   :  { %v2271_v15 = vpop.xlane.xlu0 %2270 }
0x17fc   :  { %3597 = vrcp.f32 %v2271_v15 }
0x17ff   :  { %v2282_v18 = vpop.permute.xlu0 %2281 }
0x1800   :  { %3422 = vmatprep.subr.mxu0 %v2282_v18 }
0x1801   :  { %3423 = vmatpush3.msra.mxu0 %v2282_v18  ;;  %v3088_v18 = vld [vmem:[%s4403_s11 + $0xf8] sm:$0xff] }
0x1802   :  { %3424 = vmatprep.subr.mxu0 %v2280_v17 }
0x1803   :  { %3425 = vmatpush3.msra.mxu0 %v2280_v17  ;;  %v2377_v31 = vpop.permute.xlu0 %2376  ;;  %v3087_v17 = vld [vmem:[%s4403_s11 + $0xf0] sm:$0xff] }
0x1804   :  { %3429 = vmatprep.subr.mxu0 %v3056_v11  ;;  %v2392_v37 = vsel %vm311_vm7, %v2390_v32, %v2377_v31  ;;  %v3073_v31 = vld [vmem:[%s4403_s11 + $0x80] sm:$0xff] }
0x1805   :  { %v3596_v21 = vpop.eup %3595  ;;  %v3070_v32 = vld [vmem:[%s4402_s10 + $0x1] ss:$0 sm:$0xff] }
0x1806   :  { %v2278_v24 = vmul.f32 %v3596_v21, %v3592_v10  ;;  %v3086_v21 = vld [vmem:[%s4403_s11 + $0xe8] sm:$0xff] }
0x1809   :  { %v3598_v22 = vpop.eup %3597 }
0x180a   :  { %v2277_v23 = vmul.f32 %v3598_v22, %v3594_v19  ;;  %v3085_v22 = vld [vmem:[%s4403_s11 + $0xe0] sm:$0xff] }
0x180c   :  { %3426 = vmatprep.mubr.msk.f32.mxu0 %vm311_vm7, %v2277_v23  ;;  %v3084_v23 = vld [vmem:[%s4403_s11 + $0xd8] sm:$0xff] }
0x180d   :  { %3427 = vmatmul.mubr.msk.f32.vlgmr.msra.gmra.mxu0 %vm311_vm7, %v2278_v24  ;;  %v3083_v24 = vld [vmem:[%s4403_s11 + $0xd0] sm:$0xff] }
0x180e   :  { %3430 = vmatpush3.msra.mxu0 %v3056_v11  ;;  %v3082_v11 = vld [vmem:[%s4403_s11 + $0xc8] sm:$0xff] }
0x180f   :  { %3431 = vmatprep.subr.mxu0 %v3055_v25 }
0x1810   :  { %3432 = vmatpush3.msra.mxu0 %v3055_v25  ;;  %v3081_v25 = vld [vmem:[%s4403_s11 + $0xc0] sm:$0xff] }
0x1811   :  { %3433 = vmatprep.subr.mxu0 %v3054_v26 }
0x1812   :  { %3434 = vmatpush3.msra.mxu0 %v3054_v26  ;;  %v3080_v26 = vld [vmem:[%s4403_s11 + $0xb8] sm:$0xff] }
0x1813   :  { %3435 = vmatprep.subr.mxu0 %v3053_v27 }
0x1814   :  { %3436 = vmatpush3.msra.mxu0 %v3053_v27  ;;  %v3079_v27 = vld [vmem:[%s4403_s11 + $0xb0] sm:$0xff] }
0x1815   :  { %3451 = vmatprep.subr.mxu0 %v3088_v18 }
0x18cd   :  { %v3428_v1 = vpop.f32.mrf.mxu0 }
0x18ce   :  { %2386 = vrot.lane.b32.xlu1 %v3428_v1, %s4457_s30  ;;  %v3078_v1 = vld [vmem:[%s4403_s11 + $0xa8] sm:$0xff] }
0x18cf   :  { %v2357_v28 = vpop.f32.mrf.mxu0 }
0x18d0   :  { %2384 = vrot.lane.b32.xlu0 %v2357_v28, %s4457_s30  ;;  %v3077_v28 = vld [vmem:[%s4403_s11 + $0xa0] sm:$0xff] }
0x1940   :  { %v2387_v33 = vpop.permute.xlu1 %2386 }
0x1941   :  { %v2395_v43 = vsel %vm1061_vm9, %v2393_v41, %v2387_v33 }
0x1942   :  { %v2385_v40 = vpop.permute.xlu0 %2384 }
0x1943   :  { %v2394_v42 = vsel %vm1061_vm9, %v2392_v37, %v2385_v40 }
0x1944   :  { %3437 = vmatprep.mubr.msk.f32.mxu0 %vm81_vm0, %v2394_v42 }
0x1945   :  { %3438 = vmatmul.mubr.msk.f32.vlgmr.msra.gmra.mxu0 %vm81_vm0, %v2395_v43 }
0x1946   :  { %3452 = vmatpush3.msra.mxu0 %v3088_v18 }
0x1947   :  { %3453 = vmatprep.subr.mxu0 %v3087_v17 }
0x1948   :  { %3454 = vmatpush3.msra.mxu0 %v3087_v17 }
0x1949   :  { %3455 = vmatprep.subr.mxu0 %v3086_v21 }
0x194a   :  { %3456 = vmatpush3.msra.mxu0 %v3086_v21 }
0x194b   :  { %3457 = vmatprep.subr.mxu0 %v3085_v22 }
0x194c   :  { %3458 = vmatpush3.msra.mxu0 %v3085_v22 }
0x194d   :  { %3459 = vmatprep.subr.mxu0 %v3084_v23 }
0x194e   :  { %3460 = vmatpush3.msra.mxu0 %v3084_v23 }
0x194f   :  { %3461 = vmatprep.subr.mxu0 %v3083_v24 }
0x1950   :  { %3462 = vmatpush3.msra.mxu0 %v3083_v24 }
0x1951   :  { %3463 = vmatprep.subr.mxu0 %v3082_v11 }
0x1952   :  { %3464 = vmatpush3.msra.mxu0 %v3082_v11  ;;  %v3091_v11 = vld [vmem:[%s4405_s13] ss:$0 sm:$0xff] }
0x1953   :  { %3465 = vmatprep.subr.mxu0 %v3081_v25 }
0x1954   :  { %3466 = vmatpush3.msra.mxu0 %v3081_v25 }
0x1955   :  { %3467 = vmatprep.subr.mxu0 %v3080_v26 }
0x1956   :  { %3468 = vmatpush3.msra.mxu0 %v3080_v26 }
0x1957   :  { %3469 = vmatprep.subr.mxu0 %v3079_v27 }
0x1958   :  { %3470 = vmatpush3.msra.mxu0 %v3079_v27 }
0x1959   :  { %3471 = vmatprep.subr.mxu0 %v3078_v1 }
0x195a   :  { %3472 = vmatpush3.msra.mxu0 %v3078_v1 }
0x195b   :  { %3473 = vmatprep.subr.mxu0 %v3077_v28 }
0x195c   :  { %3474 = vmatpush3.msra.mxu0 %v3077_v28  ;;  %v3092_v28 = vld [vmem:[%s4406_s14] ss:$0 sm:$0xff] }
0x195d   :  { %3475 = vmatprep.subr.mxu0 %v3076_v0 }
0x195e   :  { %3476 = vmatpush3.msra.mxu0 %v3076_v0 }
0x195f   :  { %3477 = vmatprep.subr.mxu0 %v3075_v29 }
0x1960   :  { %3478 = vmatpush3.msra.mxu0 %v3075_v29 }
0x1961   :  { %3479 = vmatprep.subr.mxu0 %v3074_v30 }
0x1962   :  { %3480 = vmatpush3.msra.mxu0 %v3074_v30 }
0x1963   :  { %3481 = vmatprep.subr.mxu0 %v3073_v31 }
0x1964   :  { %3482 = vmatpush3.msra.mxu0 %v3073_v31  ;;  %v3665_v31 = vmov 0  }
0x1965   :  { %3518 = vset.pattern.permute.xlu1 %v3665_v31  ;;  %3517 = vset.pattern.permute.xlu0 %v3665_v31 }
0x1a05   :  { %v3439_v45 = vpop.f32.mrf.mxu0 }
0x1a06   :  { %v2487_v46 = vadd.f32 %v3439_v45, %v3058_v56 }
0x1a07   :  { %v2481_v54 = vpop.f32.mrf.mxu0 }
0x1a08   :  { %v4253_v38 = vadd.f32 %v2487_v46, %v4067_v35  ;;  %v2482_v16 = vadd.f32 %v3058_v56, %v2481_v54 }
0x1a0a   :  { %v4256_v47 = vadd.f32 %v2482_v16, %v4070_v39  ;;  %v2499_v20 = vsel %vm81_vm0, %v4253_v38, 0.0 }
0x1a0b   :  { %2500 = vadd.xlane.f32.xlu1 %v2499_v20 }
0x1a0c   :  { %v2496_v48 = vsel %vm81_vm0, %v4256_v47, 0.0 }
0x1a0d   :  { %2497 = vadd.xlane.f32.xlu0 %v2496_v48 }
0x1a94   :  { %v2501_v50 = vpop.xlane.xlu1 %2500 }
0x1a95   :  { %v2503_v51 = vmul.f32 0.03125, %v2501_v50 }
0x1a96   :  { %v2498_v53 = vpop.xlane.xlu0 %2497 }
0x1a97   :  { %v2502_v55 = vmul.f32 0.03125, %v2498_v53  ;;  %v2505_v57 = vsub.f32 %v4253_v38, %v2503_v51 }
0x1a99   :  { %v2504_v35 = vsub.f32 %v4256_v47, %v2502_v55  ;;  %v2507_v36 = vmul.f32 %v2505_v57, %v2505_v57 }
0x1a9b   :  { %v2506_v58 = vmul.f32 %v2504_v35, %v2504_v35  ;;  %v2511_v59 = vsel %vm81_vm0, %v2507_v36, 0.0  ;;  %v3090_v36 = vld [vmem:[%s4404_s12 + $0x1] ss:$0 sm:$0xff] }
0x1a9d   :  { %v2508_v39 = vsel %vm81_vm0, %v2506_v58, 0.0 }
0x1a9e   :  { %2509 = vadd.xlane.f32.xlu0 %v2508_v39 }
0x1aa2   :  { %2512 = vadd.xlane.f32.xlu0 %v2511_v59 }
0x1b27   :  { %v2510_v2 = vpop.xlane.xlu0 %2509 }
0x1b28   :  { %v2514_v3 = vmul.f32 0.03125, %v2510_v2 }
0x1b2a   :  { %v2516_v4 = vadd.f32 1e-05, %v2514_v3 }
0x1b2b   :  { %v2513_v5 = vpop.xlane.xlu0 %2512 }
0x1b2c   :  { %3599 = vrsqrt.f32 %v2516_v4  ;;  %v2515_v49 = vmul.f32 0.03125, %v2513_v5 }
0x1b2e   :  { %v2517_v6 = vadd.f32 1e-05, %v2515_v49 }
0x1b30   :  { %3601 = vrsqrt.f32 %v2517_v6 }
0x1b39   :  { %v3600_v7 = vpop.eup %3599 }
0x1b3a   :  { %v2520_v9 = vmul.f32 %v3600_v7, %v2504_v35 }
0x1b3c   :  { %v2528_v10 = vmul.f32 %v3063_v8, %v2520_v9 }
0x1b3d   :  { %v3602_v12 = vpop.eup %3601 }
0x1b3e   :  { %v2521_v19 = vmul.f32 %v3602_v12, %v2505_v57  ;;  %v2536_v13 = vadd.f32 %v3064_v52, %v2528_v10 }
0x1b40   :  { %v2529_v14 = vmul.f32 %v3063_v8, %v2521_v19  ;;  %3448 = vmatprep.mubr.msk.f32.mxu1 %vm81_vm0, %v2536_v13  ;;  %v2798_v19 = vld [vmem:[%s4407_s15 + $0x10] sm:$0xff]  ;;  %v2797_v13 = vld [vmem:[%s4407_s15 + $0x8] sm:$0xff] }
0x1b42   :  { %v2537_v15 = vadd.f32 %v3064_v52, %v2529_v14  ;;  %v2796_v14 = vld [vmem:[%s4407_s15] sm:$0xff] }
0x1b44   :  { %3449 = vmatmul.mubr.msk.f32.vlgmr.msra.gmra.mxu1 %vm81_vm0, %v2537_v15 }
0x1c04   :  { %v3450_v33 = vpop.f32.mrf.mxu1 }
0x1c05   :  { %v2629_v34 = vadd.f32 %v3450_v33, %v3070_v32 }
0x1c06   :  { %v2623_v37 = vpop.f32.mrf.mxu1 }
0x1c07   :  { %v2635_v40 = vmul.f32 0.044715, %v2629_v34  ;;  %v2624_v41 = vadd.f32 %v3070_v32, %v2623_v37  ;;  %v2633_v35 = vmul.f32 0.5, %v2629_v34  ;;  %v3093_v32 = vld [vmem:[%s4408_s16] ss:$0 sm:$0xff] }
0x1c09   :  { %v2637_v42 = vmul.f32 %v2635_v40, %v2629_v34  ;;  %v2634_v43 = vmul.f32 0.044715, %v2624_v41  ;;  %v2632_v55 = vmul.f32 0.5, %v2624_v41 }
0x1c0b   :  { %v2639_v56 = vmul.f32 %v2637_v42, %v2629_v34  ;;  %v2636_v45 = vmul.f32 %v2634_v43, %v2624_v41  ;;  %v2916_v43 = vld [vmem:[%s4409_s17 + $0x8] sm:$0xff] }
0x1c0d   :  { %v2641_v46 = vadd.f32 %v2639_v56, %v2629_v34  ;;  %v2638_v54 = vmul.f32 %v2636_v45, %v2624_v41  ;;  %v2915_v56 = vld [vmem:[%s4409_s17] sm:$0xff]  ;;  %s3666_s17 = smov [#allocation2]  }
0x1c0e   :  { %s2955_s1 = sshll.u32 %s3666_s17, 4  ;;  %s2956_s1 = int_to_ptr.vmem [resolvable:$true] %s2955_s1 }
0x1c0f   :  { %v2640_v16 = vadd.f32 %v2638_v54, %v2624_v41  ;;  %v2643_v20 = vmul.f32 0.7978846, %v2641_v46  ;;  %s3619_s6 = scalar_lea.vmem %s2956_s1, 256  ;;  %p3624_p1 = scmp.lt.s32.totalorder %s2956_s1, %s2956_s1 }
0x1c10   :  { %p3620_p0 = scmp.ne.s32.totalorder %s2956_s1, %s3619_s6  ;;  %p3625_p2 = scmp.lt.s32.totalorder %s3619_s6, %s3619_s6 }
0x1c11   :  { %v2642_v48 = vmul.f32 0.7978846, %v2640_v16  ;;  %3603 = vtanh.f32 %v2643_v20 }
0x1c12   :  { %p3626_p3 = por %p3625_p2, %p3624_p1 }
0x1c13   :  { %3605 = vtanh.f32 %v2642_v48 }
0x1c14   :  { %p3627_p4 = pnand %p3626_p3, %p3620_p0 }
0x1c1e   :  { %v3604_v50 = vpop.eup %3603 }
0x1c1f   :  { %v2647_v53 = vadd.f32 1.0, %v3604_v50 }
0x1c20   :  { %v3606_v51 = vpop.eup %3605 }
0x1c21   :  { %v2646_v57 = vadd.f32 1.0, %v3606_v51  ;;  %v2649_v39 = vmul.f32 %v2647_v53, %v2633_v35 }
0x1c23   :  { %v2648_v58 = vmul.f32 %v2646_v57, %v2632_v55 }
0x1c25   :  { %3483 = vmatprep.mubr.f32.mxu0 %v2648_v58 }
0x1c26   :  { %3484 = vmatmul.mubr.f32.vlgmr.msra.gmra.mxu0 %v2649_v39 }
0x1ce6   :  { %v3485_v59 = vpop.f32.mrf.mxu0 }
0x1ce7   :  { %v2747_v60 = vadd.f32 %v3485_v59, %v3090_v36 }
0x1ce8   :  { %v2741_v61 = vpop.f32.mrf.mxu0 }
0x1ce9   :  { %v2751_v62 = vadd.f32 %v2747_v60, %v4253_v38  ;;  %v2742_v63 = vadd.f32 %v3090_v36, %v2741_v61 }
0x1ceb   :  { %v2750_v2 = vadd.f32 %v2742_v63, %v4256_v47  ;;  %v2757_v3 = vsel %vm81_vm0, %v2751_v62, 0.0  ;;  %v2799_v47 = vld [vmem:[%s4407_s15 + $0x18] sm:$0xff] }
0x1cec   :  { %2758 = vadd.xlane.f32.xlu1 %v2757_v3  ;;  %3486 = vmatprep.subr.mxu1 %v2799_v47 }
0x1ced   :  { %v2754_v4 = vsel %vm81_vm0, %v2750_v2, 0.0  ;;  %3487 = vmatpush3.msra.mxu1 %v2799_v47 }
0x1cee   :  { %2755 = vadd.xlane.f32.xlu0 %v2754_v4  ;;  %3488 = vmatprep.subr.mxu1 %v2798_v19 }
0x1cef   :  { %3489 = vmatpush3.msra.mxu1 %v2798_v19 }
0x1cf0   :  { %3490 = vmatprep.subr.mxu1 %v2797_v13 }
0x1cf1   :  { %3491 = vmatpush3.msra.mxu1 %v2797_v13 }
0x1cf2   :  { %3492 = vmatprep.subr.mxu1 %v2796_v14 }
0x1cf3   :  { %3493 = vmatpush3.msra.mxu1 %v2796_v14 }
0x1d75   :  { %v2759_v5 = vpop.xlane.xlu1 %2758 }
0x1d76   :  { %v2761_v49 = vmul.f32 0.03125, %v2759_v5 }
0x1d77   :  { %v2756_v6 = vpop.xlane.xlu0 %2755 }
0x1d78   :  { %v2763_v7 = vsub.f32 %v2751_v62, %v2761_v49  ;;  %v2760_v8 = vmul.f32 0.03125, %v2756_v6 }
0x1d7a   :  { %v2762_v9 = vsub.f32 %v2750_v2, %v2760_v8  ;;  %v2765_v52 = vmul.f32 %v2763_v7, %v2763_v7 }
0x1d7c   :  { %v2769_v10 = vsel %vm81_vm0, %v2765_v52, 0.0  ;;  %v2764_v12 = vmul.f32 %v2762_v9, %v2762_v9 }
0x1d7d   :  { %2770 = vadd.xlane.f32.xlu1 %v2769_v10 }
0x1d7e   :  { %v2766_v38 = vsel %vm81_vm0, %v2764_v12, 0.0 }
0x1d7f   :  { %2767 = vadd.xlane.f32.xlu0 %v2766_v38 }
0x1e06   :  { %v2771_v15 = vpop.xlane.xlu1 %2770 }
0x1e07   :  { %v2773_v18 = vmul.f32 0.03125, %v2771_v15 }
0x1e08   :  { %v2768_v17 = vpop.xlane.xlu0 %2767 }
0x1e09   :  { %v2775_v21 = vadd.f32 1e-05, %v2773_v18  ;;  %v2772_v22 = vmul.f32 0.03125, %v2768_v17 }
0x1e0b   :  { %3607 = vrsqrt.f32 %v2775_v21  ;;  %v2774_v23 = vadd.f32 1e-05, %v2772_v22 }
0x1e0d   :  { %3609 = vrsqrt.f32 %v2774_v23 }
0x1e18   :  { %v3608_v24 = vpop.eup %3607 }
0x1e19   :  { %v2779_v25 = vmul.f32 %v3608_v24, %v2763_v7 }
0x1e1a   :  { %v3610_v26 = vpop.eup %3609 }
0x1e1b   :  { %v2778_v27 = vmul.f32 %v3610_v26, %v2762_v9  ;;  %v2787_v1 = vmul.f32 %v3091_v11, %v2779_v25 }
0x1e1d   :  { %v2786_v0 = vmul.f32 %v3091_v11, %v2778_v27  ;;  %v2795_v30 = vadd.f32 %v3092_v28, %v2787_v1 }
0x1e1f   :  { %v2794_v29 = vadd.f32 %v3092_v28, %v2786_v0 }
0x1e21   :  { %3494 = vmatprep.mubr.msk.f32.mxu1 %vm81_vm0, %v2794_v29 }
0x1e22   :  { %3495 = vmatmul.mubr.msk.f32.vlgmr.msra.gmra.mxu1 %vm81_vm0, %v2795_v30 }
0x1ee2   :  { %v3496_v33 = vpop.f32.mrf.mxu1 }
0x1ee3   :  { %v2885_v34 = vadd.f32 %v3496_v33, %v3093_v32 }
0x1ee4   :  { %v2879_v37 = vpop.f32.mrf.mxu1 }
0x1ee5   :  { %v2880_v40 = vadd.f32 %v3093_v32, %v2879_v37  ;;  %v2894_v41 = vsel %vm2888_vm10, %v2885_v34, -inf  ;;  %2890 = vst.msk [vmem:[#allocation2 + $0x8] sm:$0xff] %vm2888_vm10, %v2885_v34 }
0x1ee6   :  { %2895 = vmax.xlane.f32.xlu1 %v2894_v41 }
0x1ee7   :  { %2889 = vst.msk [vmem:[#allocation2] sm:$0xff] %vm2888_vm10, %v2880_v40  ;;  %v2891_v42 = vsel %vm2888_vm10, %v2880_v40, -inf }
0x1ee8   :  { %2892 = vmax.xlane.f32.xlu0 %v2891_v42 }
0x1ef7   :  { %2921 = vperm.xlu1 %3518, %v2916_v43  }
0x1efe   :  { %2918 = vperm.xlu0 %3517, %v2915_v56  }
0x1f6f   :  { %v2896_v45 = vpop.xlane.xlu1 %2895 }
0x1f70   :  { %v2898_v46 = vsub.f32 %v2885_v34, %v2896_v45 }
0x1f71   :  { %v2893_v54 = vpop.xlane.xlu0 %2892 }
0x1f72   :  { %v2901_v16 = vmul.f32 1.442695, %v2898_v46  ;;  %v2897_v20 = vsub.f32 %v2880_v40, %v2893_v54 }
0x1f73   :  { %v2922_v57 = vpop.permute.xlu1 %2921 }
0x1f74   :  { %3611 = vpow2.f32 %v2901_v16  ;;  %v2899_v48 = vmul.f32 1.442695, %v2897_v20  ;;  %vm2924_vm12 = vcmp.eq.s32.totalorder %v3826_v44, %v2922_v57 }
0x1f75   :  { %v2926_v36 = vsel %vm2924_vm12, %v2885_v34, 0.0 }
0x1f76   :  { %3613 = vpow2.f32 %v2899_v48  ;;  %v2930_v59 = vsel %vm2888_vm10, %v2926_v36, 0.0 }
0x1f79   :  { %v2919_v50 = vpop.permute.xlu0 %2918 }
0x1f7a   :  { %vm2923_vm11 = vcmp.eq.s32.totalorder %v3826_v44, %v2919_v50 }
0x1f7b   :  { %v2925_v58 = vsel %vm2923_vm11, %v2880_v40, 0.0 }
0x1f7c   :  { %v2927_v39 = vsel %vm2888_vm10, %v2925_v58, 0.0 }
0x1f81   :  { %v3612_v51 = vpop.eup %3611 }
0x1f82   :  { %v2906_v53 = vsel %vm2888_vm10, %v3612_v51, 0.0 }
0x1f83   :  { %v3614_v55 = vpop.eup %3613  ;;  %2907 = vadd.xlane.f32.xlu0 %v2906_v53 }
0x1f84   :  { %v2903_v35 = vsel %vm2888_vm10, %v3614_v55, 0.0 }
0x1f85   :  { %2904 = vadd.xlane.f32.xlu1 %v2903_v35 }
0x1f89   :  { %2928 = vadd.xlane.f32.xlu1 %v2927_v39 }
0x1f8d   :  { %2931 = vadd.xlane.f32.xlu1 %v2930_v59 }
0x200c   :  { %v2908_v60 = vpop.xlane.xlu0 %2907 }
0x200d   :  { %3615 = vlog2.f32 %v2908_v60 }
0x200e   :  { %v2905_v61 = vpop.xlane.xlu1 %2904 }
0x200f   :  { %3617 = vlog2.f32 %v2905_v61 }
0x2012   :  { %v2929_v62 = vpop.xlane.xlu1 %2928 }
0x2016   :  { %v2932_v49 = vpop.xlane.xlu1 %2931 }
0x201a   :  { %v3616_v63 = vpop.eup %3615 }
0x201b   :  { %v2912_v2 = vmul.f32 0.6931472, %v3616_v63 }
0x201c   :  { %v3618_v3 = vpop.eup %3617 }
0x201d   :  { %v2910_v4 = vmul.f32 0.6931472, %v3618_v3  ;;  %v2914_v5 = vadd.f32 %v2912_v2, %v2896_v45 }
0x201f   :  { %v2913_v6 = vadd.f32 %v2910_v4, %v2893_v54  ;;  %v2934_v44 = vsub.f32 %v2914_v5, %v2932_v49 }
0x2021   :  { %v2933_v7 = vsub.f32 %v2913_v6, %v2929_v62  ;;  %v2937_v9 = vsel %vm2935_vm13, %v2934_v44, 0.0 }
0x2023   :  { %v2936_v8 = vsel %vm2935_vm13, %v2933_v7, 0.0 }
0x2024   :  { %v2938_v52 = vadd.f32 %v2937_v9, %v2936_v8 }
0x2026   :  { %2939 = vadd.xlane.f32.xlu1 %v2938_v52 }
0x2027   :  { %3630 = shalt.err (!%p3627_p4)
}
0x2028   :  { %s3667_s24 = smov 128   ;;  %s3668_s27 = smov [#allocation5]  }
0x2029   :  { %2961 = dma.vmem_to_hbm [thread:$0]  %s2956_s1, 256, %s4410_s18, [#allocation3], %s3667_s24, %s3667_s24, %s4455_s2  }
0x20af   :  { %v2940_v10 = vpop.xlane.xlu1 %2939 }
0x20b0   :  { %v2941_v12 = vrot.slane %v2940_v10, 4 }
0x20b2   :  { %v2942_v38 = vadd.f32 %v2941_v12, %v2940_v10 }
0x20b4   :  { %v2943_v47 = vrot.slane %v2942_v38, 2 }
0x20b6   :  { %v2944_v19 = vadd.f32 %v2943_v47, %v2942_v38 }
0x20b8   :  { %v2945_v13 = vrot.slane %v2944_v19, 1 }
0x20ba   :  { %v2946_v14 = vadd.f32 %v2945_v13, %v2944_v19 }
0x20bc   :  { %3497 = vpush %v2946_v14 }
0x20ed   :  { %s3498_s26 = spop %3497 }
0x20ee   :  { %2949 = sst [smem:[#allocation5]] %s3498_s26 }
0x20ef   :  { %2969 = dma.smem_to_hbm %s3668_s27, 16, %s4411_s19, [#allocation4]  }
0x20f0   :  { %3647 = dma.done.wait [#allocation3], 256  }
0x20f1   :  { %3648 = vsyncadd [#allocation3], 4294967040 }
0x20f2   :  { %3649 = dma.done.wait [#allocation4], 16  }
0x20f3   :  { %3650 = vsyncadd [#allocation4], 4294967280 }
0x20f4   :  { %2976 = sfence }
0x20f5   :  { %2977 = vsyncpa [#allocation3], 1 }
0x20f6   :  { %2978 = vsyncpa [#allocation4], 1 }

</bundles_post_ra>
